<compile_context>
chip_gen: v7x
topology: tpu7x:2x2x1
jax: 0.10.0
libtpu: 0.0.40
codegen_flags: <defaults>
</compile_context>

<pallas_src>
import math

import jax
import jax.numpy as jnp
from jax.experimental import pallas as pl
from jax.experimental.pallas import tpu as pltpu

# ----------------------------- configuration ------------------------------
B = 2             # batch
S = 8             # seq_len (power of two; bit tricks below rely on it)
BS = B * S        # all token rows processed together in one kernel
D = 128           # hidden size (n_embd); original LLaMA uses 4096
H = 4             # attention heads
HD = D // H       # head dim
F = 256           # MLP intermediate size
V = 64            # vocab size
PAD_ID = 0        # synthetic pad token id (tokenizer.unk_token in the original)
NUM_LABELS = 2
EPS = 1e-6

SLAB_W = 128      # lane-dense fused-head output width (cols 0:2 = cls, col 2 = v_head)

assert S & (S - 1) == 0, "S must be a power of two"
_S_LOG2 = S.bit_length() - 1


# ------------------------------ kernel -------------------------------------
def _rmsnorm(x, w):
    var = jnp.mean(x * x, axis=-1, keepdims=True)
    return x * jax.lax.rsqrt(var + EPS) * w


def fused_reward_kernel(ids_ref, x_ref, lns_ref, wqkv_ref, wo_ref,
                        wgu_ref, wd_ref, whead_ref, out_ref):
    """Decoder layer + fused reward head in a single invocation (no grid).

    ids_ref : SMEM int32 [B*S]   (flat input_ids, used for the key-pad mask)
    x_ref   : VMEM f32  [B*S, D] (embedded tokens, residual stream)
    lns_ref : VMEM f32  [8, 128] (row 0/1/2 = ln1/ln2/lnf, row 3 = cls_b padded)
    out_ref : VMEM f32  [B*S, 128] = final_hidden @ Whead + cls_b
    """
    x = x_ref[...]                                   # [BS, D] f32 residual
    lns = lns_ref[...]                               # [8, 128] packed params
    ln1, ln2, lnf, cls_b = lns[0:1], lns[1:2], lns[2:3], lns[3:4]

    # --- attention bias: block-diagonal causal + key padding --------------
    # Both batch elements are fused into one [BS, BS] score matrix;
    # cross-batch entries are masked.  S is a power of two -> shifts/ands.
    row = jax.lax.broadcasted_iota(jnp.int32, (BS, BS), 0)
    col = jax.lax.broadcasted_iota(jnp.int32, (BS, BS), 1)
    same_batch = jnp.right_shift(row, _S_LOG2) == jnp.right_shift(col, _S_LOG2)
    causal = jnp.bitwise_and(col, S - 1) <= jnp.bitwise_and(row, S - 1)
    bias = jnp.where(jnp.logical_and(same_batch, causal), 0.0, -1e9)

    # key-padding bias derived in-kernel from SMEM ids (== attention_mask
    # for pad-tokenized inputs); built elementwise, 1 vreg-wide row.
    col1 = jax.lax.broadcasted_iota(jnp.int32, (1, BS), 1)
    key_bias = jnp.zeros((1, BS), jnp.float32)
    for t in range(BS):
        kb = jnp.where(ids_ref[t] == PAD_ID, -1e9, 0.0)
        key_bias = jnp.where(col1 == t, kb, key_bias)
    bias = bias + key_bias                           # broadcast over queries

    # --- self attention -----------------------------------------------------
    h = _rmsnorm(x, ln1)
    # fused q|k|v projection, bf16 operands, f32 MXU accumulation
    qkv = jnp.dot(h.astype(jnp.bfloat16), wqkv_ref[...],
                  preferred_element_type=jnp.float32)          # [BS, 3D] f32
    qkv_b = qkv.astype(jnp.bfloat16)
    # TODO(synk): rotary position embeddings of the original LLaMA backbone omitted.

    scale = 1.0 / math.sqrt(HD)
    heads = []
    for i in range(H):            # static loop, plain 2-D MXU ops (no stacks)
        q_i = qkv_b[:, i * HD:(i + 1) * HD]                    # [BS, HD]
        k_i = qkv_b[:, D + i * HD:D + (i + 1) * HD]
        v_i = qkv_b[:, 2 * D + i * HD:2 * D + (i + 1) * HD]
        # q @ k^T via dot_general contracting the last dim of both operands
        s_i = jax.lax.dot_general(q_i, k_i, (((1,), (1,)), ((), ())),
                                  preferred_element_type=jnp.float32)
        s_i = s_i * scale + bias                               # [BS, BS] f32
        s_i = s_i - jnp.max(s_i, axis=-1, keepdims=True)
        p_i = jnp.exp(s_i)
        # divide -> EUP reciprocal (free slot)
        p_i = p_i * pl.reciprocal(jnp.sum(p_i, axis=-1, keepdims=True),
                                  approx=True)
        heads.append(jnp.dot(p_i.astype(jnp.bfloat16), v_i,
                             preferred_element_type=jnp.float32))  # [BS, HD]

    # concat(heads) -> one [BS, D] tile -> single K=128 W_O matmul
    attn_cat = jnp.concatenate(heads, axis=1)                  # [BS, D] f32
    x = x + jnp.dot(attn_cat.astype(jnp.bfloat16), wo_ref[...],
                    preferred_element_type=jnp.float32)

    # --- MLP (SwiGLU, fused gate|up matmul) ----------------------------------
    h2 = _rmsnorm(x, ln2)
    gu = jnp.dot(h2.astype(jnp.bfloat16), wgu_ref[...],
                 preferred_element_type=jnp.float32)           # [BS, 2F]
    gate, up = gu[:, :F], gu[:, F:]
    x = x + jnp.dot((jax.nn.silu(gate) * up).astype(jnp.bfloat16), wd_ref[...],
                    preferred_element_type=jnp.float32)

    hidden = _rmsnorm(x, lnf)                                  # [BS, D]

    # --- fused reward head: one lane-dense MXU matmul, one dense store -------
    # Whead cols 0:2 = classifier weight, col 2 = v_head weight, rest zero.
    # nn.Dropout(0.1) is identity in eval/inference mode.
    y = jnp.dot(hidden.astype(jnp.bfloat16), whead_ref[...],
                preferred_element_type=jnp.float32) + cls_b    # [BS, 128]
    out_ref[...] = y


# ------------------------------ wrappers ------------------------------------
def run_fused_reward_model(x2d, input_ids_flat, p):
    """Single pallas_call (no grid): whole arrays live in VMEM (<1 MB total)."""
    vmem = pl.BlockSpec(memory_space=pltpu.MemorySpace.VMEM)
    return pl.pallas_call(
        fused_reward_kernel,
        out_shape=jax.ShapeDtypeStruct((BS, SLAB_W), jnp.float32),
        in_specs=[
            pl.BlockSpec(memory_space=pltpu.MemorySpace.SMEM),  # input_ids
            vmem,                                               # x
            vmem,                                               # packed ln/cls_b
            vmem, vmem, vmem, vmem, vmem,                       # weights
        ],
        out_specs=pl.BlockSpec(memory_space=pltpu.MemorySpace.VMEM),
    )(input_ids_flat, x2d, p["lns"], p["wqkv"], p["wo"], p["wgu"], p["wd"],
      p["whead"])


def init_params(key):
    ks = jax.random.split(key, 11)
    n = lambda k, shp, s=0.02: jax.random.normal(k, shp, jnp.float32) * s
    wq, wk, wv = n(ks[1], (D, D)), n(ks[2], (D, D)), n(ks[3], (D, D))
    wg, wu = n(ks[5], (D, F)), n(ks[6], (D, F))
    cls_w = n(ks[9], (D, NUM_LABELS))          # classifier = Linear(D, 2)
    cls_b = n(ks[10], (1, NUM_LABELS))
    v_w = n(ks[8], (1, D))                     # v_head = Linear(D, 1, bias=False)

    # Packed reward-head weight: cols 0:2 = classifier, col 2 = v_head.
    whead = jnp.zeros((D, SLAB_W), jnp.float32)
    whead = whead.at[:, :NUM_LABELS].set(cls_w)
    whead = whead.at[:, NUM_LABELS].set(v_w[0])

    # Packed small f32 params: one (8, 128) tile -> a single DMA.
    lns = jnp.zeros((8, D), jnp.float32)
    lns = lns.at[0].set(1.0).at[1].set(1.0).at[2].set(1.0)     # ln1/ln2/lnf
    lns = lns.at[3, :NUM_LABELS].set(cls_b[0])                 # classifier bias

    return {
        "embed": n(ks[0], (V, D), 1.0),
        "lns": lns,
        # fused q|k|v projection, stored bf16 for the MXU (f32 accumulation)
        "wqkv": jnp.concatenate([wq, wk, wv], axis=1).astype(jnp.bfloat16),
        "wo": n(ks[4], (D, D)).astype(jnp.bfloat16),
        # fused gate|up projection
        "wgu": jnp.concatenate([wg, wu], axis=1).astype(jnp.bfloat16),
        "wd": n(ks[7], (F, D)).astype(jnp.bfloat16),
        # fused classifier|v_head weight (lane-dense [D, 128])
        "whead": whead.astype(jnp.bfloat16),
    }


def gpt_reward_model_forward(params, input_ids, attention_mask=None, labels=None):
    # attention_mask accepted for API parity with the PyTorch module; the
    # key-padding mask is derived in-kernel from input_ids (identical for
    # pad-tokenized inputs).
    x = jnp.take(params["embed"], input_ids, axis=0).reshape(BS, D)  # [BS, D]
    y = run_fused_reward_model(x, input_ids.reshape(BS).astype(jnp.int32), params)

    # tiny XLA-side extraction from the dense slab (layout plumbing, not compute)
    logits = y[S - 1::S, :NUM_LABELS]                 # last-token rows  [B, 2]
    rewards = y[:, NUM_LABELS].reshape(B, S)          # v_head column    [B, S]

    # scores[i] = rewards[i, first_pad_index - 1]  (torch wraps to -1 if no pad at 0)
    idx = jnp.arange(S, dtype=jnp.int32)[None, :]
    c_ind = jnp.min(jnp.where(input_ids == PAD_ID, idx, S), axis=1)   # [B]
    scores = rewards[jnp.arange(B), (c_ind - 1) % S]                  # [B]

    loss = None
    if labels is not None:                            # CrossEntropyLoss
        logp = jax.nn.log_softmax(logits, axis=-1)
        loss = -jnp.mean(jnp.take_along_axis(logp, labels[:, None], axis=1))
    return loss, logits, rewards, scores


# -------------------------------- main --------------------------------------
if __name__ == "__main__":
    key = jax.random.PRNGKey(0)
    pkey, ikey = jax.random.split(key)
    params = init_params(pkey)

    input_ids = jax.random.randint(ikey, (B, S), 1, V, dtype=jnp.int32)
    input_ids = input_ids.at[1, 6:].set(PAD_ID)   # second sequence is padded
    attention_mask = (input_ids != PAD_ID).astype(jnp.float32)
    labels = jnp.array([0, 1], dtype=jnp.int32)

    loss, logits, rewards, scores = gpt_reward_model_forward(
        params, input_ids, attention_mask, labels)
    jax.block_until_ready((loss, logits, rewards, scores))
    assert logits.shape == (B, NUM_LABELS)
    assert rewards.shape == (B, S)
    assert scores.shape == (B,)
    print("KERNEL_OK")
</pallas_src>

<mosaic_0001>
module attributes {stable_mosaic.version = 11 : i64} {
  func.func @fused_reward_kernel(%arg0: memref<16xi32, #tpu.memory_space<smem>>, %arg1: memref<16x128xf32, #tpu.memory_space<vmem>>, %arg2: memref<8x128xf32, #tpu.memory_space<vmem>>, %arg3: memref<128x384xbf16, #tpu.memory_space<vmem>>, %arg4: memref<128x128xbf16, #tpu.memory_space<vmem>>, %arg5: memref<128x512xbf16, #tpu.memory_space<vmem>>, %arg6: memref<256x128xbf16, #tpu.memory_space<vmem>>, %arg7: memref<128x128xbf16, #tpu.memory_space<vmem>>, %arg8: memref<16x128xf32, #tpu.memory_space<vmem>>) attributes {dimension_semantics = [], scalar_prefetch = 0 : i64, scratch_operands = 0 : i64, tpu.core_type = #tpu.core_type<tc>} {
    %c0 = arith.constant 0 : index
    %c0_0 = arith.constant 0 : index
    %0 = vector.load %arg1[%c0, %c0_0] : memref<16x128xf32, #tpu.memory_space<vmem>>, vector<16x128xf32>
    %c0_1 = arith.constant 0 : index
    %c0_2 = arith.constant 0 : index
    %1 = vector.load %arg2[%c0_1, %c0_2] : memref<8x128xf32, #tpu.memory_space<vmem>>, vector<8x128xf32>
    %2 = vector.extract_strided_slice %1 {offsets = [0, 0], sizes = [1, 128], strides = [1, 1]} : vector<8x128xf32> to vector<1x128xf32>
    %3 = vector.extract_strided_slice %1 {offsets = [1, 0], sizes = [1, 128], strides = [1, 1]} : vector<8x128xf32> to vector<1x128xf32>
    %4 = vector.extract_strided_slice %1 {offsets = [2, 0], sizes = [1, 128], strides = [1, 1]} : vector<8x128xf32> to vector<1x128xf32>
    %5 = vector.extract_strided_slice %1 {offsets = [3, 0], sizes = [1, 128], strides = [1, 1]} : vector<8x128xf32> to vector<1x128xf32>
    %6 = tpu.iota {dimensions = array<i32: 0>} : vector<16x16xi32>
    %7 = tpu.iota {dimensions = array<i32: 1>} : vector<16x16xi32>
    %c3_i32 = arith.constant 3 : i32
    %8 = vector.broadcast %c3_i32 : i32 to vector<16x16xi32>
    %9 = arith.shrsi %6, %8 : vector<16x16xi32>
    %c3_i32_3 = arith.constant 3 : i32
    %10 = vector.broadcast %c3_i32_3 : i32 to vector<16x16xi32>
    %11 = arith.shrsi %7, %10 : vector<16x16xi32>
    %12 = arith.cmpi eq, %9, %11 : vector<16x16xi32>
    %c7_i32 = arith.constant 7 : i32
    %13 = vector.broadcast %c7_i32 : i32 to vector<16x16xi32>
    %14 = arith.andi %7, %13 : vector<16x16xi32>
    %c7_i32_4 = arith.constant 7 : i32
    %15 = vector.broadcast %c7_i32_4 : i32 to vector<16x16xi32>
    %16 = arith.andi %6, %15 : vector<16x16xi32>
    %17 = arith.cmpi sle, %14, %16 : vector<16x16xi32>
    %18 = arith.andi %12, %17 : vector<16x16xi1>
    %cst = arith.constant 0.000000e+00 : f32
    %cst_5 = arith.constant -1.000000e+09 : f32
    %19 = vector.broadcast %cst : f32 to vector<16x16xf32>
    %20 = vector.broadcast %cst_5 : f32 to vector<16x16xf32>
    %21 = arith.select %18, %19, %20 : vector<16x16xi1>, vector<16x16xf32>
    %22 = tpu.iota {dimensions = array<i32: 1>} : vector<1x16xi32>
    %cst_6 = arith.constant 0.000000e+00 : f32
    %23 = vector.broadcast %cst_6 : f32 to vector<1x16xf32>
    %c0_7 = arith.constant 0 : index
    %24 = memref.load %arg0[%c0_7] : memref<16xi32, #tpu.memory_space<smem>>
    %c0_i32 = arith.constant 0 : i32
    %25 = arith.cmpi eq, %24, %c0_i32 : i32
    %cst_8 = arith.constant -1.000000e+09 : f32
    %cst_9 = arith.constant 0.000000e+00 : f32
    %26 = arith.select %25, %cst_8, %cst_9 : f32
    %c0_i32_10 = arith.constant 0 : i32
    %27 = vector.broadcast %c0_i32_10 : i32 to vector<1x16xi32>
    %28 = arith.cmpi eq, %22, %27 : vector<1x16xi32>
    %29 = vector.broadcast %26 : f32 to vector<1x16xf32>
    %30 = arith.select %28, %29, %23 : vector<1x16xi1>, vector<1x16xf32>
    %c1 = arith.constant 1 : index
    %31 = memref.load %arg0[%c1] : memref<16xi32, #tpu.memory_space<smem>>
    %c0_i32_11 = arith.constant 0 : i32
    %32 = arith.cmpi eq, %31, %c0_i32_11 : i32
    %cst_12 = arith.constant -1.000000e+09 : f32
    %cst_13 = arith.constant 0.000000e+00 : f32
    %33 = arith.select %32, %cst_12, %cst_13 : f32
    %c1_i32 = arith.constant 1 : i32
    %34 = vector.broadcast %c1_i32 : i32 to vector<1x16xi32>
    %35 = arith.cmpi eq, %22, %34 : vector<1x16xi32>
    %36 = vector.broadcast %33 : f32 to vector<1x16xf32>
    %37 = arith.select %35, %36, %30 : vector<1x16xi1>, vector<1x16xf32>
    %c2 = arith.constant 2 : index
    %38 = memref.load %arg0[%c2] : memref<16xi32, #tpu.memory_space<smem>>
    %c0_i32_14 = arith.constant 0 : i32
    %39 = arith.cmpi eq, %38, %c0_i32_14 : i32
    %cst_15 = arith.constant -1.000000e+09 : f32
    %cst_16 = arith.constant 0.000000e+00 : f32
    %40 = arith.select %39, %cst_15, %cst_16 : f32
    %c2_i32 = arith.constant 2 : i32
    %41 = vector.broadcast %c2_i32 : i32 to vector<1x16xi32>
    %42 = arith.cmpi eq, %22, %41 : vector<1x16xi32>
    %43 = vector.broadcast %40 : f32 to vector<1x16xf32>
    %44 = arith.select %42, %43, %37 : vector<1x16xi1>, vector<1x16xf32>
    %c3 = arith.constant 3 : index
    %45 = memref.load %arg0[%c3] : memref<16xi32, #tpu.memory_space<smem>>
    %c0_i32_17 = arith.constant 0 : i32
    %46 = arith.cmpi eq, %45, %c0_i32_17 : i32
    %cst_18 = arith.constant -1.000000e+09 : f32
    %cst_19 = arith.constant 0.000000e+00 : f32
    %47 = arith.select %46, %cst_18, %cst_19 : f32
    %c3_i32_20 = arith.constant 3 : i32
    %48 = vector.broadcast %c3_i32_20 : i32 to vector<1x16xi32>
    %49 = arith.cmpi eq, %22, %48 : vector<1x16xi32>
    %50 = vector.broadcast %47 : f32 to vector<1x16xf32>
    %51 = arith.select %49, %50, %44 : vector<1x16xi1>, vector<1x16xf32>
    %c4 = arith.constant 4 : index
    %52 = memref.load %arg0[%c4] : memref<16xi32, #tpu.memory_space<smem>>
    %c0_i32_21 = arith.constant 0 : i32
    %53 = arith.cmpi eq, %52, %c0_i32_21 : i32
    %cst_22 = arith.constant -1.000000e+09 : f32
    %cst_23 = arith.constant 0.000000e+00 : f32
    %54 = arith.select %53, %cst_22, %cst_23 : f32
    %c4_i32 = arith.constant 4 : i32
    %55 = vector.broadcast %c4_i32 : i32 to vector<1x16xi32>
    %56 = arith.cmpi eq, %22, %55 : vector<1x16xi32>
    %57 = vector.broadcast %54 : f32 to vector<1x16xf32>
    %58 = arith.select %56, %57, %51 : vector<1x16xi1>, vector<1x16xf32>
    %c5 = arith.constant 5 : index
    %59 = memref.load %arg0[%c5] : memref<16xi32, #tpu.memory_space<smem>>
    %c0_i32_24 = arith.constant 0 : i32
    %60 = arith.cmpi eq, %59, %c0_i32_24 : i32
    %cst_25 = arith.constant -1.000000e+09 : f32
    %cst_26 = arith.constant 0.000000e+00 : f32
    %61 = arith.select %60, %cst_25, %cst_26 : f32
    %c5_i32 = arith.constant 5 : i32
    %62 = vector.broadcast %c5_i32 : i32 to vector<1x16xi32>
    %63 = arith.cmpi eq, %22, %62 : vector<1x16xi32>
    %64 = vector.broadcast %61 : f32 to vector<1x16xf32>
    %65 = arith.select %63, %64, %58 : vector<1x16xi1>, vector<1x16xf32>
    %c6 = arith.constant 6 : index
    %66 = memref.load %arg0[%c6] : memref<16xi32, #tpu.memory_space<smem>>
    %c0_i32_27 = arith.constant 0 : i32
    %67 = arith.cmpi eq, %66, %c0_i32_27 : i32
    %cst_28 = arith.constant -1.000000e+09 : f32
    %cst_29 = arith.constant 0.000000e+00 : f32
    %68 = arith.select %67, %cst_28, %cst_29 : f32
    %c6_i32 = arith.constant 6 : i32
    %69 = vector.broadcast %c6_i32 : i32 to vector<1x16xi32>
    %70 = arith.cmpi eq, %22, %69 : vector<1x16xi32>
    %71 = vector.broadcast %68 : f32 to vector<1x16xf32>
    %72 = arith.select %70, %71, %65 : vector<1x16xi1>, vector<1x16xf32>
    %c7 = arith.constant 7 : index
    %73 = memref.load %arg0[%c7] : memref<16xi32, #tpu.memory_space<smem>>
    %c0_i32_30 = arith.constant 0 : i32
    %74 = arith.cmpi eq, %73, %c0_i32_30 : i32
    %cst_31 = arith.constant -1.000000e+09 : f32
    %cst_32 = arith.constant 0.000000e+00 : f32
    %75 = arith.select %74, %cst_31, %cst_32 : f32
    %c7_i32_33 = arith.constant 7 : i32
    %76 = vector.broadcast %c7_i32_33 : i32 to vector<1x16xi32>
    %77 = arith.cmpi eq, %22, %76 : vector<1x16xi32>
    %78 = vector.broadcast %75 : f32 to vector<1x16xf32>
    %79 = arith.select %77, %78, %72 : vector<1x16xi1>, vector<1x16xf32>
    %c8 = arith.constant 8 : index
    %80 = memref.load %arg0[%c8] : memref<16xi32, #tpu.memory_space<smem>>
    %c0_i32_34 = arith.constant 0 : i32
    %81 = arith.cmpi eq, %80, %c0_i32_34 : i32
    %cst_35 = arith.constant -1.000000e+09 : f32
    %cst_36 = arith.constant 0.000000e+00 : f32
    %82 = arith.select %81, %cst_35, %cst_36 : f32
    %c8_i32 = arith.constant 8 : i32
    %83 = vector.broadcast %c8_i32 : i32 to vector<1x16xi32>
    %84 = arith.cmpi eq, %22, %83 : vector<1x16xi32>
    %85 = vector.broadcast %82 : f32 to vector<1x16xf32>
    %86 = arith.select %84, %85, %79 : vector<1x16xi1>, vector<1x16xf32>
    %c9 = arith.constant 9 : index
    %87 = memref.load %arg0[%c9] : memref<16xi32, #tpu.memory_space<smem>>
    %c0_i32_37 = arith.constant 0 : i32
    %88 = arith.cmpi eq, %87, %c0_i32_37 : i32
    %cst_38 = arith.constant -1.000000e+09 : f32
    %cst_39 = arith.constant 0.000000e+00 : f32
    %89 = arith.select %88, %cst_38, %cst_39 : f32
    %c9_i32 = arith.constant 9 : i32
    %90 = vector.broadcast %c9_i32 : i32 to vector<1x16xi32>
    %91 = arith.cmpi eq, %22, %90 : vector<1x16xi32>
    %92 = vector.broadcast %89 : f32 to vector<1x16xf32>
    %93 = arith.select %91, %92, %86 : vector<1x16xi1>, vector<1x16xf32>
    %c10 = arith.constant 10 : index
    %94 = memref.load %arg0[%c10] : memref<16xi32, #tpu.memory_space<smem>>
    %c0_i32_40 = arith.constant 0 : i32
    %95 = arith.cmpi eq, %94, %c0_i32_40 : i32
    %cst_41 = arith.constant -1.000000e+09 : f32
    %cst_42 = arith.constant 0.000000e+00 : f32
    %96 = arith.select %95, %cst_41, %cst_42 : f32
    %c10_i32 = arith.constant 10 : i32
    %97 = vector.broadcast %c10_i32 : i32 to vector<1x16xi32>
    %98 = arith.cmpi eq, %22, %97 : vector<1x16xi32>
    %99 = vector.broadcast %96 : f32 to vector<1x16xf32>
    %100 = arith.select %98, %99, %93 : vector<1x16xi1>, vector<1x16xf32>
    %c11 = arith.constant 11 : index
    %101 = memref.load %arg0[%c11] : memref<16xi32, #tpu.memory_space<smem>>
    %c0_i32_43 = arith.constant 0 : i32
    %102 = arith.cmpi eq, %101, %c0_i32_43 : i32
    %cst_44 = arith.constant -1.000000e+09 : f32
    %cst_45 = arith.constant 0.000000e+00 : f32
    %103 = arith.select %102, %cst_44, %cst_45 : f32
    %c11_i32 = arith.constant 11 : i32
    %104 = vector.broadcast %c11_i32 : i32 to vector<1x16xi32>
    %105 = arith.cmpi eq, %22, %104 : vector<1x16xi32>
    %106 = vector.broadcast %103 : f32 to vector<1x16xf32>
    %107 = arith.select %105, %106, %100 : vector<1x16xi1>, vector<1x16xf32>
    %c12 = arith.constant 12 : index
    %108 = memref.load %arg0[%c12] : memref<16xi32, #tpu.memory_space<smem>>
    %c0_i32_46 = arith.constant 0 : i32
    %109 = arith.cmpi eq, %108, %c0_i32_46 : i32
    %cst_47 = arith.constant -1.000000e+09 : f32
    %cst_48 = arith.constant 0.000000e+00 : f32
    %110 = arith.select %109, %cst_47, %cst_48 : f32
    %c12_i32 = arith.constant 12 : i32
    %111 = vector.broadcast %c12_i32 : i32 to vector<1x16xi32>
    %112 = arith.cmpi eq, %22, %111 : vector<1x16xi32>
    %113 = vector.broadcast %110 : f32 to vector<1x16xf32>
    %114 = arith.select %112, %113, %107 : vector<1x16xi1>, vector<1x16xf32>
    %c13 = arith.constant 13 : index
    %115 = memref.load %arg0[%c13] : memref<16xi32, #tpu.memory_space<smem>>
    %c0_i32_49 = arith.constant 0 : i32
    %116 = arith.cmpi eq, %115, %c0_i32_49 : i32
    %cst_50 = arith.constant -1.000000e+09 : f32
    %cst_51 = arith.constant 0.000000e+00 : f32
    %117 = arith.select %116, %cst_50, %cst_51 : f32
    %c13_i32 = arith.constant 13 : i32
    %118 = vector.broadcast %c13_i32 : i32 to vector<1x16xi32>
    %119 = arith.cmpi eq, %22, %118 : vector<1x16xi32>
    %120 = vector.broadcast %117 : f32 to vector<1x16xf32>
    %121 = arith.select %119, %120, %114 : vector<1x16xi1>, vector<1x16xf32>
    %c14 = arith.constant 14 : index
    %122 = memref.load %arg0[%c14] : memref<16xi32, #tpu.memory_space<smem>>
    %c0_i32_52 = arith.constant 0 : i32
    %123 = arith.cmpi eq, %122, %c0_i32_52 : i32
    %cst_53 = arith.constant -1.000000e+09 : f32
    %cst_54 = arith.constant 0.000000e+00 : f32
    %124 = arith.select %123, %cst_53, %cst_54 : f32
    %c14_i32 = arith.constant 14 : i32
    %125 = vector.broadcast %c14_i32 : i32 to vector<1x16xi32>
    %126 = arith.cmpi eq, %22, %125 : vector<1x16xi32>
    %127 = vector.broadcast %124 : f32 to vector<1x16xf32>
    %128 = arith.select %126, %127, %121 : vector<1x16xi1>, vector<1x16xf32>
    %c15 = arith.constant 15 : index
    %129 = memref.load %arg0[%c15] : memref<16xi32, #tpu.memory_space<smem>>
    %c0_i32_55 = arith.constant 0 : i32
    %130 = arith.cmpi eq, %129, %c0_i32_55 : i32
    %cst_56 = arith.constant -1.000000e+09 : f32
    %cst_57 = arith.constant 0.000000e+00 : f32
    %131 = arith.select %130, %cst_56, %cst_57 : f32
    %c15_i32 = arith.constant 15 : i32
    %132 = vector.broadcast %c15_i32 : i32 to vector<1x16xi32>
    %133 = arith.cmpi eq, %22, %132 : vector<1x16xi32>
    %134 = vector.broadcast %131 : f32 to vector<1x16xf32>
    %135 = arith.select %133, %134, %128 : vector<1x16xi1>, vector<1x16xf32>
    %136 = vector.broadcast %135 : vector<1x16xf32> to vector<16x16xf32>
    %137 = arith.addf %21, %136 : vector<16x16xf32>
    %138 = arith.mulf %0, %0 : vector<16x128xf32>
    %cst_58 = arith.constant dense<0.000000e+00> : vector<16xf32>
    %139 = vector.multi_reduction <add>, %138, %cst_58 [1] : vector<16x128xf32> to vector<16xf32>
    %140 = vector.shape_cast %139 : vector<16xf32> to vector<16x1xf32>
    %cst_59 = arith.constant 1.280000e+02 : f32
    %141 = vector.broadcast %cst_59 : f32 to vector<16x1xf32>
    %142 = arith.divf %140, %141 : vector<16x1xf32>
    %cst_60 = arith.constant 9.99999997E-7 : f32
    %143 = vector.broadcast %cst_60 : f32 to vector<16x1xf32>
    %144 = arith.addf %142, %143 : vector<16x1xf32>
    %145 = math.rsqrt %144 : vector<16x1xf32>
    %146 = vector.broadcast %145 : vector<16x1xf32> to vector<16x128xf32>
    %147 = arith.mulf %0, %146 : vector<16x128xf32>
    %148 = vector.broadcast %2 : vector<1x128xf32> to vector<16x128xf32>
    %149 = arith.mulf %147, %148 : vector<16x128xf32>
    %150 = arith.truncf %149 : vector<16x128xf32> to vector<16x128xbf16>
    %c0_61 = arith.constant 0 : index
    %c0_62 = arith.constant 0 : index
    %151 = vector.load %arg3[%c0_61, %c0_62] : memref<128x384xbf16, #tpu.memory_space<vmem>>, vector<128x384xbf16>
    %cst_63 = arith.constant dense<0.000000e+00> : vector<16x384xf32>
    %152 = tpu.matmul %150, %151, %cst_63 {dimension_numbers = #tpu.dot_dimension_numbers<[1], [0], [0], [1], [0, 0, 1, 1], [], []>} : vector<16x128xbf16>, vector<128x384xbf16>, vector<16x384xf32> -> vector<16x384xf32>
    %153 = arith.truncf %152 : vector<16x384xf32> to vector<16x384xbf16>
    %154 = vector.extract_strided_slice %153 {offsets = [0, 0], sizes = [16, 32], strides = [1, 1]} : vector<16x384xbf16> to vector<16x32xbf16>
    %155 = vector.extract_strided_slice %153 {offsets = [0, 128], sizes = [16, 32], strides = [1, 1]} : vector<16x384xbf16> to vector<16x32xbf16>
    %156 = vector.extract_strided_slice %153 {offsets = [0, 256], sizes = [16, 32], strides = [1, 1]} : vector<16x384xbf16> to vector<16x32xbf16>
    %cst_64 = arith.constant dense<0.000000e+00> : vector<16x16xf32>
    %157 = tpu.matmul %154, %155, %cst_64 {dimension_numbers = #tpu.dot_dimension_numbers<[1], [1], [0], [0], [0, 0, 1, 0], [], []>} : vector<16x32xbf16>, vector<16x32xbf16>, vector<16x16xf32> -> vector<16x16xf32>
    %cst_65 = arith.constant 0.176776692 : f32
    %158 = vector.broadcast %cst_65 : f32 to vector<16x16xf32>
    %159 = arith.mulf %157, %158 : vector<16x16xf32>
    %160 = arith.addf %159, %137 : vector<16x16xf32>
    %cst_66 = arith.constant dense<0xFF800000> : vector<16xf32>
    %161 = vector.multi_reduction <maximumf>, %160, %cst_66 [1] : vector<16x16xf32> to vector<16xf32>
    %162 = vector.shape_cast %161 : vector<16xf32> to vector<16x1xf32>
    %163 = vector.broadcast %162 : vector<16x1xf32> to vector<16x16xf32>
    %164 = arith.subf %160, %163 : vector<16x16xf32>
    %165 = math.exp %164 : vector<16x16xf32>
    %cst_67 = arith.constant dense<0.000000e+00> : vector<16xf32>
    %166 = vector.multi_reduction <add>, %165, %cst_67 [1] : vector<16x16xf32> to vector<16xf32>
    %167 = vector.shape_cast %166 : vector<16xf32> to vector<16x1xf32>
    %168 = tpu.reciprocal %167 {approx = true} : vector<16x1xf32> -> vector<16x1xf32>
    %169 = vector.broadcast %168 : vector<16x1xf32> to vector<16x16xf32>
    %170 = arith.mulf %165, %169 : vector<16x16xf32>
    %171 = arith.truncf %170 : vector<16x16xf32> to vector<16x16xbf16>
    %cst_68 = arith.constant dense<0.000000e+00> : vector<16x32xf32>
    %172 = tpu.matmul %171, %156, %cst_68 {dimension_numbers = #tpu.dot_dimension_numbers<[1], [0], [0], [1], [0, 0, 1, 1], [], []>} : vector<16x16xbf16>, vector<16x32xbf16>, vector<16x32xf32> -> vector<16x32xf32>
    %173 = vector.extract_strided_slice %153 {offsets = [0, 32], sizes = [16, 32], strides = [1, 1]} : vector<16x384xbf16> to vector<16x32xbf16>
    %174 = vector.extract_strided_slice %153 {offsets = [0, 160], sizes = [16, 32], strides = [1, 1]} : vector<16x384xbf16> to vector<16x32xbf16>
    %175 = vector.extract_strided_slice %153 {offsets = [0, 288], sizes = [16, 32], strides = [1, 1]} : vector<16x384xbf16> to vector<16x32xbf16>
    %cst_69 = arith.constant dense<0.000000e+00> : vector<16x16xf32>
    %176 = tpu.matmul %173, %174, %cst_69 {dimension_numbers = #tpu.dot_dimension_numbers<[1], [1], [0], [0], [0, 0, 1, 0], [], []>} : vector<16x32xbf16>, vector<16x32xbf16>, vector<16x16xf32> -> vector<16x16xf32>
    %cst_70 = arith.constant 0.176776692 : f32
    %177 = vector.broadcast %cst_70 : f32 to vector<16x16xf32>
    %178 = arith.mulf %176, %177 : vector<16x16xf32>
    %179 = arith.addf %178, %137 : vector<16x16xf32>
    %cst_71 = arith.constant dense<0xFF800000> : vector<16xf32>
    %180 = vector.multi_reduction <maximumf>, %179, %cst_71 [1] : vector<16x16xf32> to vector<16xf32>
    %181 = vector.shape_cast %180 : vector<16xf32> to vector<16x1xf32>
    %182 = vector.broadcast %181 : vector<16x1xf32> to vector<16x16xf32>
    %183 = arith.subf %179, %182 : vector<16x16xf32>
    %184 = math.exp %183 : vector<16x16xf32>
    %cst_72 = arith.constant dense<0.000000e+00> : vector<16xf32>
    %185 = vector.multi_reduction <add>, %184, %cst_72 [1] : vector<16x16xf32> to vector<16xf32>
    %186 = vector.shape_cast %185 : vector<16xf32> to vector<16x1xf32>
    %187 = tpu.reciprocal %186 {approx = true} : vector<16x1xf32> -> vector<16x1xf32>
    %188 = vector.broadcast %187 : vector<16x1xf32> to vector<16x16xf32>
    %189 = arith.mulf %184, %188 : vector<16x16xf32>
    %190 = arith.truncf %189 : vector<16x16xf32> to vector<16x16xbf16>
    %cst_73 = arith.constant dense<0.000000e+00> : vector<16x32xf32>
    %191 = tpu.matmul %190, %175, %cst_73 {dimension_numbers = #tpu.dot_dimension_numbers<[1], [0], [0], [1], [0, 0, 1, 1], [], []>} : vector<16x16xbf16>, vector<16x32xbf16>, vector<16x32xf32> -> vector<16x32xf32>
    %192 = vector.extract_strided_slice %153 {offsets = [0, 64], sizes = [16, 32], strides = [1, 1]} : vector<16x384xbf16> to vector<16x32xbf16>
    %193 = vector.extract_strided_slice %153 {offsets = [0, 192], sizes = [16, 32], strides = [1, 1]} : vector<16x384xbf16> to vector<16x32xbf16>
    %194 = vector.extract_strided_slice %153 {offsets = [0, 320], sizes = [16, 32], strides = [1, 1]} : vector<16x384xbf16> to vector<16x32xbf16>
    %cst_74 = arith.constant dense<0.000000e+00> : vector<16x16xf32>
    %195 = tpu.matmul %192, %193, %cst_74 {dimension_numbers = #tpu.dot_dimension_numbers<[1], [1], [0], [0], [0, 0, 1, 0], [], []>} : vector<16x32xbf16>, vector<16x32xbf16>, vector<16x16xf32> -> vector<16x16xf32>
    %cst_75 = arith.constant 0.176776692 : f32
    %196 = vector.broadcast %cst_75 : f32 to vector<16x16xf32>
    %197 = arith.mulf %195, %196 : vector<16x16xf32>
    %198 = arith.addf %197, %137 : vector<16x16xf32>
    %cst_76 = arith.constant dense<0xFF800000> : vector<16xf32>
    %199 = vector.multi_reduction <maximumf>, %198, %cst_76 [1] : vector<16x16xf32> to vector<16xf32>
    %200 = vector.shape_cast %199 : vector<16xf32> to vector<16x1xf32>
    %201 = vector.broadcast %200 : vector<16x1xf32> to vector<16x16xf32>
    %202 = arith.subf %198, %201 : vector<16x16xf32>
    %203 = math.exp %202 : vector<16x16xf32>
    %cst_77 = arith.constant dense<0.000000e+00> : vector<16xf32>
    %204 = vector.multi_reduction <add>, %203, %cst_77 [1] : vector<16x16xf32> to vector<16xf32>
    %205 = vector.shape_cast %204 : vector<16xf32> to vector<16x1xf32>
    %206 = tpu.reciprocal %205 {approx = true} : vector<16x1xf32> -> vector<16x1xf32>
    %207 = vector.broadcast %206 : vector<16x1xf32> to vector<16x16xf32>
    %208 = arith.mulf %203, %207 : vector<16x16xf32>
    %209 = arith.truncf %208 : vector<16x16xf32> to vector<16x16xbf16>
    %cst_78 = arith.constant dense<0.000000e+00> : vector<16x32xf32>
    %210 = tpu.matmul %209, %194, %cst_78 {dimension_numbers = #tpu.dot_dimension_numbers<[1], [0], [0], [1], [0, 0, 1, 1], [], []>} : vector<16x16xbf16>, vector<16x32xbf16>, vector<16x32xf32> -> vector<16x32xf32>
    %211 = vector.extract_strided_slice %153 {offsets = [0, 96], sizes = [16, 32], strides = [1, 1]} : vector<16x384xbf16> to vector<16x32xbf16>
    %212 = vector.extract_strided_slice %153 {offsets = [0, 224], sizes = [16, 32], strides = [1, 1]} : vector<16x384xbf16> to vector<16x32xbf16>
    %213 = vector.extract_strided_slice %153 {offsets = [0, 352], sizes = [16, 32], strides = [1, 1]} : vector<16x384xbf16> to vector<16x32xbf16>
    %cst_79 = arith.constant dense<0.000000e+00> : vector<16x16xf32>
    %214 = tpu.matmul %211, %212, %cst_79 {dimension_numbers = #tpu.dot_dimension_numbers<[1], [1], [0], [0], [0, 0, 1, 0], [], []>} : vector<16x32xbf16>, vector<16x32xbf16>, vector<16x16xf32> -> vector<16x16xf32>
    %cst_80 = arith.constant 0.176776692 : f32
    %215 = vector.broadcast %cst_80 : f32 to vector<16x16xf32>
    %216 = arith.mulf %214, %215 : vector<16x16xf32>
    %217 = arith.addf %216, %137 : vector<16x16xf32>
    %cst_81 = arith.constant dense<0xFF800000> : vector<16xf32>
    %218 = vector.multi_reduction <maximumf>, %217, %cst_81 [1] : vector<16x16xf32> to vector<16xf32>
    %219 = vector.shape_cast %218 : vector<16xf32> to vector<16x1xf32>
    %220 = vector.broadcast %219 : vector<16x1xf32> to vector<16x16xf32>
    %221 = arith.subf %217, %220 : vector<16x16xf32>
    %222 = math.exp %221 : vector<16x16xf32>
    %cst_82 = arith.constant dense<0.000000e+00> : vector<16xf32>
    %223 = vector.multi_reduction <add>, %222, %cst_82 [1] : vector<16x16xf32> to vector<16xf32>
    %224 = vector.shape_cast %223 : vector<16xf32> to vector<16x1xf32>
    %225 = tpu.reciprocal %224 {approx = true} : vector<16x1xf32> -> vector<16x1xf32>
    %226 = vector.broadcast %225 : vector<16x1xf32> to vector<16x16xf32>
    %227 = arith.mulf %222, %226 : vector<16x16xf32>
    %228 = arith.truncf %227 : vector<16x16xf32> to vector<16x16xbf16>
    %cst_83 = arith.constant dense<0.000000e+00> : vector<16x32xf32>
    %229 = tpu.matmul %228, %213, %cst_83 {dimension_numbers = #tpu.dot_dimension_numbers<[1], [0], [0], [1], [0, 0, 1, 1], [], []>} : vector<16x16xbf16>, vector<16x32xbf16>, vector<16x32xf32> -> vector<16x32xf32>
    %230 = tpu.concatenate %172, %191, %210, %229 in 1 : vector<16x32xf32>, vector<16x32xf32>, vector<16x32xf32>, vector<16x32xf32> -> vector<16x128xf32>
    %231 = arith.truncf %230 : vector<16x128xf32> to vector<16x128xbf16>
    %c0_84 = arith.constant 0 : index
    %c0_85 = arith.constant 0 : index
    %232 = vector.load %arg4[%c0_84, %c0_85] : memref<128x128xbf16, #tpu.memory_space<vmem>>, vector<128x128xbf16>
    %cst_86 = arith.constant dense<0.000000e+00> : vector<16x128xf32>
    %233 = tpu.matmul %231, %232, %cst_86 {dimension_numbers = #tpu.dot_dimension_numbers<[1], [0], [0], [1], [0, 0, 1, 1], [], []>} : vector<16x128xbf16>, vector<128x128xbf16>, vector<16x128xf32> -> vector<16x128xf32>
    %234 = arith.addf %0, %233 : vector<16x128xf32>
    %235 = arith.mulf %234, %234 : vector<16x128xf32>
    %cst_87 = arith.constant dense<0.000000e+00> : vector<16xf32>
    %236 = vector.multi_reduction <add>, %235, %cst_87 [1] : vector<16x128xf32> to vector<16xf32>
    %237 = vector.shape_cast %236 : vector<16xf32> to vector<16x1xf32>
    %cst_88 = arith.constant 1.280000e+02 : f32
    %238 = vector.broadcast %cst_88 : f32 to vector<16x1xf32>
    %239 = arith.divf %237, %238 : vector<16x1xf32>
    %cst_89 = arith.constant 9.99999997E-7 : f32
    %240 = vector.broadcast %cst_89 : f32 to vector<16x1xf32>
    %241 = arith.addf %239, %240 : vector<16x1xf32>
    %242 = math.rsqrt %241 : vector<16x1xf32>
    %243 = vector.broadcast %242 : vector<16x1xf32> to vector<16x128xf32>
    %244 = arith.mulf %234, %243 : vector<16x128xf32>
    %245 = vector.broadcast %3 : vector<1x128xf32> to vector<16x128xf32>
    %246 = arith.mulf %244, %245 : vector<16x128xf32>
    %247 = arith.truncf %246 : vector<16x128xf32> to vector<16x128xbf16>
    %c0_90 = arith.constant 0 : index
    %c0_91 = arith.constant 0 : index
    %248 = vector.load %arg5[%c0_90, %c0_91] : memref<128x512xbf16, #tpu.memory_space<vmem>>, vector<128x512xbf16>
    %cst_92 = arith.constant dense<0.000000e+00> : vector<16x512xf32>
    %249 = tpu.matmul %247, %248, %cst_92 {dimension_numbers = #tpu.dot_dimension_numbers<[1], [0], [0], [1], [0, 0, 1, 1], [], []>} : vector<16x128xbf16>, vector<128x512xbf16>, vector<16x512xf32> -> vector<16x512xf32>
    %250 = vector.extract_strided_slice %249 {offsets = [0, 0], sizes = [16, 256], strides = [1, 1]} : vector<16x512xf32> to vector<16x256xf32>
    %251 = vector.extract_strided_slice %249 {offsets = [0, 256], sizes = [16, 256], strides = [1, 1]} : vector<16x512xf32> to vector<16x256xf32>
    %252 = arith.negf %250 : vector<16x256xf32>
    %253 = math.exp %252 : vector<16x256xf32>
    %cst_93 = arith.constant 1.000000e+00 : f32
    %254 = vector.broadcast %cst_93 : f32 to vector<16x256xf32>
    %255 = arith.addf %254, %253 : vector<16x256xf32>
    %256 = arith.divf %254, %255 : vector<16x256xf32>
    %257 = arith.mulf %250, %256 : vector<16x256xf32>
    %258 = arith.mulf %257, %251 : vector<16x256xf32>
    %259 = arith.truncf %258 : vector<16x256xf32> to vector<16x256xbf16>
    %c0_94 = arith.constant 0 : index
    %c0_95 = arith.constant 0 : index
    %260 = vector.load %arg6[%c0_94, %c0_95] : memref<256x128xbf16, #tpu.memory_space<vmem>>, vector<256x128xbf16>
    %cst_96 = arith.constant dense<0.000000e+00> : vector<16x128xf32>
    %261 = tpu.matmul %259, %260, %cst_96 {dimension_numbers = #tpu.dot_dimension_numbers<[1], [0], [0], [1], [0, 0, 1, 1], [], []>} : vector<16x256xbf16>, vector<256x128xbf16>, vector<16x128xf32> -> vector<16x128xf32>
    %262 = arith.addf %234, %261 : vector<16x128xf32>
    %263 = arith.mulf %262, %262 : vector<16x128xf32>
    %cst_97 = arith.constant dense<0.000000e+00> : vector<16xf32>
    %264 = vector.multi_reduction <add>, %263, %cst_97 [1] : vector<16x128xf32> to vector<16xf32>
    %265 = vector.shape_cast %264 : vector<16xf32> to vector<16x1xf32>
    %cst_98 = arith.constant 1.280000e+02 : f32
    %266 = vector.broadcast %cst_98 : f32 to vector<16x1xf32>
    %267 = arith.divf %265, %266 : vector<16x1xf32>
    %cst_99 = arith.constant 9.99999997E-7 : f32
    %268 = vector.broadcast %cst_99 : f32 to vector<16x1xf32>
    %269 = arith.addf %267, %268 : vector<16x1xf32>
    %270 = math.rsqrt %269 : vector<16x1xf32>
    %271 = vector.broadcast %270 : vector<16x1xf32> to vector<16x128xf32>
    %272 = arith.mulf %262, %271 : vector<16x128xf32>
    %273 = vector.broadcast %4 : vector<1x128xf32> to vector<16x128xf32>
    %274 = arith.mulf %272, %273 : vector<16x128xf32>
    %275 = arith.truncf %274 : vector<16x128xf32> to vector<16x128xbf16>
    %c0_100 = arith.constant 0 : index
    %c0_101 = arith.constant 0 : index
    %276 = vector.load %arg7[%c0_100, %c0_101] : memref<128x128xbf16, #tpu.memory_space<vmem>>, vector<128x128xbf16>
    %cst_102 = arith.constant dense<0.000000e+00> : vector<16x128xf32>
    %277 = tpu.matmul %275, %276, %cst_102 {dimension_numbers = #tpu.dot_dimension_numbers<[1], [0], [0], [1], [0, 0, 1, 1], [], []>} : vector<16x128xbf16>, vector<128x128xbf16>, vector<16x128xf32> -> vector<16x128xf32>
    %278 = vector.broadcast %5 : vector<1x128xf32> to vector<16x128xf32>
    %279 = arith.addf %277, %278 : vector<16x128xf32>
    %c0_103 = arith.constant 0 : index
    %c0_104 = arith.constant 0 : index
    %280 = vector.load %arg8[%c0_103, %c0_104] : memref<16x128xf32, #tpu.memory_space<vmem>>, vector<16x128xf32>
    tpu.vector_store %arg8[%c0_103, %c0_104], %279 {strides = array<i32>} : memref<16x128xf32, #tpu.memory_space<vmem>>, vector<16x128xf32>,
    return
  }
}

</mosaic_0001>

<bundles_post_ra>
// kernel: tpu_custom_call.1
= control target key start
LH: loop header
LB: loop body
LE: loop exit
PB: predicated region body
PF: predicated region fallthrough
CT: control target
= control target key end

     0   :  { %13 = vsyncpa [#allocation5], 0  ;;  %s2906_s0 = inlined_call_operand.hbm [shape: s32[16], index: 0, kind: input, shape index: {}]   ;;  %s2907_s1 = inlined_call_operand.hbm [shape: f32[16,128], index: 1, kind: input, shape index: {}]   ;;  %s2908_s2 = inlined_call_operand.hbm [shape: f32[8,128], index: 2, kind: input, shape index: {}]   ;;  %s2909_s3 = inlined_call_operand.hbm [shape: bf16[128,384], index: 3, kind: input, shape index: {}]   ;;  %s2910_s4 = inlined_call_operand.hbm [shape: bf16[128,128], index: 4, kind: input, shape index: {}]   ;;  %s2911_s5 = inlined_call_operand.hbm [shape: bf16[128,512], index: 5, kind: input, shape index: {}]   ;;  %s2912_s6 = inlined_call_operand.hbm [shape: bf16[256,128], index: 6, kind: input, shape index: {}]   ;;  %s2913_s7 = inlined_call_operand.hbm [shape: bf16[128,128], index: 7, kind: input, shape index: {}]   ;;  %s2914_s8 = inlined_call_operand.hbm [shape: f32[16,128], index: 8, kind: output, shape index: {}]  }
   0x1   :  { %14 = vsyncpa [#allocation3], 0 }
   0x2   :  { %15 = vsyncpa [#allocation8], 0 }
   0x3   :  { %16 = vsyncpa [#allocation11], 0 }
   0x4   :  { %17 = vsyncpa [#allocation14], 0 }
   0x5   :  { %18 = vsyncpa [#allocation4], 0  ;;  %s2518_s27 = smov [#allocation7]   ;;  %s2519_s29 = smov [#allocation10]  }
   0x6   :  { %s45_s28 = sshll.u32 %s2518_s27, 4  ;;  %s66_s30 = sshll.u32 %s2519_s29, 4  ;;  %s46_s28 = int_to_ptr.vmem [resolvable:$true] %s45_s28  ;;  %s2586_s30 = int_to_ptr.vmem [resolvable:$true] %s66_s30 }
   0x7   :  { %s2320_s11 = scalar_lea.hbm %s2908_s2, 128 }
   0x8   :  { %p2321_p0 = scmp.ne.s32.totalorder %s2908_s2, %s2320_s11  ;;  %p2324_p1 = scmp.lt.u32.totalorder %s2320_s11, %s2908_s2 }
   0xa   :  { %p2326_p2 = pnand %p2324_p1, %p2321_p0 }
   0xc   :  { %2329 = shalt.err (!%p2326_p2)
}
   0xd   :  { %s2330_s16 = scalar_lea.vmem %s46_s28, 128  ;;  %p2335_p4 = scmp.lt.s32.totalorder %s46_s28, %s46_s28 }
   0xe   :  { %p2331_p3 = scmp.ne.s32.totalorder %s46_s28, %s2330_s16  ;;  %p2336_p5 = scmp.lt.s32.totalorder %s2330_s16, %s2330_s16 }
  0x10   :  { %p2337_p6 = por %p2336_p5, %p2335_p4 }
  0x12   :  { %p2338_p7 = pnand %p2337_p6, %p2331_p3 }
  0x14   :  { %2341 = shalt.err (!%p2338_p7)
}
  0x15   :  { %48 = dma.hbm_to_vmem [thread:$0]  %s2908_s2, 128, %s46_s28, [#allocation8]  }
  0x16   :  { %s2342_s21 = scalar_lea.hbm %s2910_s4, 1024 }
  0x17   :  { %p2343_p8 = scmp.ne.s32.totalorder %s2910_s4, %s2342_s21  ;;  %p2346_p9 = scmp.lt.u32.totalorder %s2342_s21, %s2910_s4 }
  0x19   :  { %p2348_p10 = pnand %p2346_p9, %p2343_p8 }
  0x1b   :  { %2351 = shalt.err (!%p2348_p10)
}
  0x1c   :  { %s2352_s26 = scalar_lea.vmem %s2586_s30, 1024  ;;  %p2357_p12 = scmp.lt.s32.totalorder %s2586_s30, %s2586_s30 }
  0x1d   :  { %p2353_p11 = scmp.ne.s32.totalorder %s2586_s30, %s2352_s26  ;;  %p2358_p13 = scmp.lt.s32.totalorder %s2352_s26, %s2352_s26 }
  0x1f   :  { %p2359_p0 = por %p2358_p13, %p2357_p12 }
  0x21   :  { %p2360_p1 = pnand %p2359_p0, %p2353_p11 }
  0x23   :  { %2363 = shalt.err (!%p2360_p1)
}
  0x24   :  { %s2520_s2 = smov 64   ;;  %s2521_s27 = smov 4  }
  0x25   :  { %72 = dma.hbm_to_vmem [thread:$0]  %s2910_s4, 1024, %s2586_s30, [#allocation11], %s2520_s2, %s2520_s2, %s2521_s27  }
  0x26   :  { %s2522_s9 = smov [#allocation13]   ;;  %s2523_s11 = smov [#allocation6]  }
  0x27   :  { %s90_s10 = sshll.u32 %s2522_s9, 4  ;;  %s32_s12 = sshll.u32 %s2523_s11, 4  ;;  %s91_s10 = int_to_ptr.vmem [resolvable:$true] %s90_s10  ;;  %s33_s12 = int_to_ptr.vmem [resolvable:$true] %s32_s12 }
  0x28   :  { %s2364_s15 = scalar_lea.hbm %s2912_s6, 2048 }
  0x29   :  { %p2365_p2 = scmp.ne.s32.totalorder %s2912_s6, %s2364_s15  ;;  %p2368_p3 = scmp.lt.u32.totalorder %s2364_s15, %s2912_s6 }
  0x2b   :  { %p2370_p4 = pnand %p2368_p3, %p2365_p2 }
  0x2d   :  { %2373 = shalt.err (!%p2370_p4)
}
  0x2e   :  { %s2374_s4 = scalar_lea.vmem %s91_s10, 2048  ;;  %p2379_p6 = scmp.lt.s32.totalorder %s91_s10, %s91_s10 }
  0x2f   :  { %p2375_p5 = scmp.ne.s32.totalorder %s91_s10, %s2374_s4  ;;  %p2380_p7 = scmp.lt.s32.totalorder %s2374_s4, %s2374_s4 }
  0x31   :  { %p2381_p8 = por %p2380_p7, %p2379_p6 }
  0x33   :  { %p2382_p9 = pnand %p2381_p8, %p2375_p5 }
  0x35   :  { %2385 = shalt.err (!%p2382_p9)
}
  0x36   :  { %96 = dma.hbm_to_vmem [thread:$0]  %s2912_s6, 2048, %s91_s10, [#allocation14], %s2520_s2, %s2520_s2, %s2521_s27  }
  0x37   :  { %s2386_s23 = scalar_lea.hbm %s2906_s0, 16 }
  0x38   :  { %p2387_p10 = scmp.ne.s32.totalorder %s2906_s0, %s2386_s23  ;;  %p2390_p11 = scmp.lt.u32.totalorder %s2386_s23, %s2906_s0 }
  0x3a   :  { %p2392_p12 = pnand %p2390_p11, %p2387_p10 }
  0x3c   :  { %2395 = shalt.err (!%p2392_p12)
}
  0x3d   :  { %s2524_s29 = smov [#allocation2]   ;;  %s2396_s13 = scalar_lea.hbm %s2907_s1, 256 }
  0x3e   :  { %26 = dma.hbm_to_smem %s2906_s0, 16, %s2524_s29, [#allocation5]  }
  0x3f   :  { %p2397_p13 = scmp.ne.s32.totalorder %s2907_s1, %s2396_s13  ;;  %p2400_p0 = scmp.lt.u32.totalorder %s2396_s13, %s2907_s1 }
  0x41   :  { %p2402_p1 = pnand %p2400_p0, %p2397_p13 }
  0x43   :  { %2405 = shalt.err (!%p2402_p1)
}
  0x44   :  { %s2406_s18 = scalar_lea.vmem %s33_s12, 256  ;;  %p2411_p3 = scmp.lt.s32.totalorder %s33_s12, %s33_s12 }
  0x45   :  { %p2407_p2 = scmp.ne.s32.totalorder %s33_s12, %s2406_s18  ;;  %p2412_p4 = scmp.lt.s32.totalorder %s2406_s18, %s2406_s18 }
  0x47   :  { %p2413_p5 = por %p2412_p4, %p2411_p3 }
  0x49   :  { %p2414_p6 = pnand %p2413_p5, %p2407_p2 }
  0x4b   :  { %2417 = shalt.err (!%p2414_p6)
}
  0x4c   :  { %s2525_s0 = smov 128   ;;  %s2526_s19 = smov 8  }
  0x4d   :  { %38 = dma.hbm_to_vmem [thread:$0]  %s2907_s1, 256, %s33_s12, [#allocation3], %s2525_s0, %s2525_s0, %s2526_s19  }
  0x4e   :  { %s2527_s20 = smov [#allocation9]   ;;  %s2418_s24 = scalar_lea.hbm %s2909_s3, 3072 }
  0x4f   :  { %s54_s21 = sshll.u32 %s2527_s20, 4  ;;  %p2419_p7 = scmp.ne.s32.totalorder %s2909_s3, %s2418_s24  ;;  %s55_s21 = int_to_ptr.vmem [resolvable:$true] %s54_s21 }
  0x50   :  { %p2422_p8 = scmp.lt.u32.totalorder %s2418_s24, %s2909_s3 }
  0x52   :  { %p2424_p9 = pnand %p2422_p8, %p2419_p7 }
  0x54   :  { %2427 = shalt.err (!%p2424_p9)
}
  0x55   :  { %s2428_s9 = scalar_lea.vmem %s55_s21, 3072  ;;  %p2433_p11 = scmp.lt.s32.totalorder %s55_s21, %s55_s21 }
  0x56   :  { %p2429_p10 = scmp.ne.s32.totalorder %s55_s21, %s2428_s9  ;;  %p2434_p12 = scmp.lt.s32.totalorder %s2428_s9, %s2428_s9 }
  0x58   :  { %p2435_p13 = por %p2434_p12, %p2433_p11 }
  0x5a   :  { %p2436_p0 = pnand %p2435_p13, %p2429_p10 }
  0x5c   :  { %2439 = shalt.err (!%p2436_p0)
}
  0x5d   :  { %s2528_s1 = smov 192   ;;  %s2529_s12 = smov 12  }
  0x5e   :  { %60 = dma.hbm_to_vmem [thread:$0]  %s2909_s3, 3072, %s55_s21, [#allocation8], %s2528_s1, %s2528_s1, %s2529_s12  }
  0x5f   :  { %s2530_s10 = smov [#allocation12]   ;;  %s2440_s16 = scalar_lea.hbm %s2911_s5, 4096 }
  0x60   :  { %s78_s13 = sshll.u32 %s2530_s10, 4  ;;  %p2441_p1 = scmp.ne.s32.totalorder %s2911_s5, %s2440_s16  ;;  %s79_s13 = int_to_ptr.vmem [resolvable:$true] %s78_s13 }
  0x61   :  { %p2444_p2 = scmp.lt.u32.totalorder %s2440_s16, %s2911_s5 }
  0x63   :  { %p2446_p3 = pnand %p2444_p2, %p2441_p1 }
  0x65   :  { %2449 = shalt.err (!%p2446_p3)
}
  0x66   :  { %s2450_s20 = scalar_lea.vmem %s79_s13, 4096  ;;  %p2455_p5 = scmp.lt.s32.totalorder %s79_s13, %s79_s13 }
  0x67   :  { %p2451_p4 = scmp.ne.s32.totalorder %s79_s13, %s2450_s20  ;;  %p2456_p6 = scmp.lt.s32.totalorder %s2450_s20, %s2450_s20 }
  0x69   :  { %p2457_p7 = por %p2456_p6, %p2455_p5 }
  0x6b   :  { %p2458_p8 = pnand %p2457_p7, %p2451_p4 }
  0x6d   :  { %2461 = shalt.err (!%p2458_p8)
}
  0x6e   :  { %s2531_s3 = smov 256   ;;  %s2532_s21 = smov 16  }
  0x6f   :  { %84 = dma.hbm_to_vmem [thread:$0]  %s2911_s5, 4096, %s79_s13, [#allocation11], %s2531_s3, %s2531_s3, %s2532_s21  }
  0x70   :  { %s2533_s24 = smov [#allocation15]   ;;  %s2462_s29 = scalar_lea.hbm %s2913_s7, 1024 }
  0x71   :  { %s102_s25 = sshll.u32 %s2533_s24, 4  ;;  %p2463_p9 = scmp.ne.s32.totalorder %s2913_s7, %s2462_s29  ;;  %s103_s25 = int_to_ptr.vmem [resolvable:$true] %s102_s25 }
  0x72   :  { %p2466_p10 = scmp.lt.u32.totalorder %s2462_s29, %s2913_s7 }
  0x74   :  { %p2468_p11 = pnand %p2466_p10, %p2463_p9 }
  0x76   :  { %2471 = shalt.err (!%p2468_p11)
}
  0x77   :  { %s2472_s6 = scalar_lea.vmem %s103_s25, 1024  ;;  %p2477_p13 = scmp.lt.s32.totalorder %s103_s25, %s103_s25 }
  0x78   :  { %p2473_p12 = scmp.ne.s32.totalorder %s103_s25, %s2472_s6  ;;  %p2478_p0 = scmp.lt.s32.totalorder %s2472_s6, %s2472_s6 }
  0x7a   :  { %p2479_p1 = por %p2478_p0, %p2477_p13 }
  0x7c   :  { %p2480_p2 = pnand %p2479_p1, %p2473_p12 }
  0x7e   :  { %2483 = shalt.err (!%p2480_p2)
}
  0x7f   :  { %108 = dma.hbm_to_vmem [thread:$0]  %s2913_s7, 1024, %s103_s25, [#allocation14], %s2520_s2, %s2520_s2, %s2521_s27  }
  0x80   :  { %2506 = dma.done.wait [#allocation5], 16  }
  0x81   :  { %2507 = vsyncadd [#allocation5], 4294967280 }
  0x82   :  { %2508 = dma.done.wait [#allocation3], 256  }
  0x83   :  { %2509 = vsyncadd [#allocation3], 4294967040 }
  0x84   :  { %2510 = dma.done.wait [#allocation8], 3200  }
  0x85   :  { %2511 = vsyncadd [#allocation8], 4294964096 }
  0x86   :  { %2512 = dma.done.wait [#allocation11], 5120  }
  0x87   :  { %2513 = vsyncadd [#allocation11], 4294962176 }
  0x88   :  { %2514 = dma.done.wait [#allocation14], 3072  }
  0x89   :  { %2515 = vsyncadd [#allocation14], 4294964224 }
  0x8a   :  { %133 = sfence }
  0x8b   :  { %v2701_v0 = vld [vmem:[#allocation6] sm:$0xff]  ;;  %v2703_v1 = vld [vmem:[#allocation6 + $0x8] sm:$0xff]  ;;  %v2534_v4 = vmov 0.0   ;;  %v2151_v9 = vld [vmem:[#allocation9 + $0x18] ss:$12 sps:$4 sm:$0xff]   ;;  %v2535_v26 = vmov 0   ;;  %v138_v35 = vlaneseq }
  0x8c   :  { %v255_v2 = vmul.f32 %v2701_v0, %v2701_v0  ;;  %v2145_v3 = vld [vmem:[#allocation9 + $0x4] ss:$12 sps:$4 sm:$0xff]   ;;  %1999 = vmatprep.subr.bf16.mxu1 %v2534_v4  ;;  %v2147_v5 = vld [vmem:[#allocation9] ss:$12 sps:$4 sm:$0xff]   ;;  %v2148_v6 = vld [vmem:[#allocation9 + $0x8] ss:$12 sps:$4 sm:$0xff]   ;;  %v256_v7 = vmul.f32 %v2703_v1, %v2703_v1  ;;  %469 = vmatprep.mubr.bf16.mxu0 %v2535_v26 }
  0x8d   :  { %437 = vmatprep.subr.bf16.mxu0 %v2145_v3  ;;  %v2149_v8 = vld [vmem:[#allocation9 + $0x1c] ss:$12 sps:$4 sm:$0xff]   ;;  %2000 = vmatpush3.bf16.msra.mxu1 %v2148_v6  ;;  %v2152_v10 = vld [vmem:[#allocation9 + $0x20] ss:$12 sps:$4 sm:$0xff]   ;;  %v2156_v13 = vld [vmem:[#allocation9 + $0x38] ss:$12 sps:$4 sm:$0xff]  }
  0x8e   :  { %257 = vadd.xlane.f32.xlu0 %v255_v2  ;;  %438 = vmatpush1.bf16.msra.mxu0 %v2147_v5  ;;  %v2153_v11 = vld [vmem:[#allocation9 + $0x34] ss:$12 sps:$4 sm:$0xff]   ;;  %v2155_v12 = vld [vmem:[#allocation9 + $0x30] ss:$12 sps:$4 sm:$0xff]   ;;  %v2157_v14 = vld [vmem:[#allocation9 + $0x4c] ss:$12 sps:$4 sm:$0xff]  }
  0x8f   :  { %439 = vmatprep.subr.bf16.mxu0 %v2149_v8  ;;  %2001 = vmatprep.subr.bf16.mxu1 %v2534_v4  ;;  %v2159_v15 = vld [vmem:[#allocation9 + $0x48] ss:$12 sps:$4 sm:$0xff]   ;;  %v2160_v16 = vld [vmem:[#allocation9 + $0x50] ss:$12 sps:$4 sm:$0xff]   ;;  %v2163_v18 = vld [vmem:[#allocation9 + $0x60] ss:$12 sps:$4 sm:$0xff]  }
  0x90   :  { %v2161_v17 = vld [vmem:[#allocation9 + $0x64] ss:$12 sps:$4 sm:$0xff]   ;;  %v2164_v19 = vld [vmem:[#allocation9 + $0x68] ss:$12 sps:$4 sm:$0xff]   ;;  %v2168_v22 = vld [vmem:[#allocation9 + $0x80] ss:$12 sps:$4 sm:$0xff]  }
  0x91   :  { %2002 = vmatpush3.bf16.msra.mxu1 %v2152_v10  ;;  %v2165_v20 = vld [vmem:[#allocation9 + $0x7c] ss:$12 sps:$4 sm:$0xff]   ;;  %v2167_v21 = vld [vmem:[#allocation9 + $0x78] ss:$12 sps:$4 sm:$0xff]   ;;  %v2169_v23 = vld [vmem:[#allocation9 + $0x94] ss:$12 sps:$4 sm:$0xff]  }
  0x92   :  { %259 = vadd.xlane.f32.xlu0 %v256_v7  ;;  %440 = vmatpush1.bf16.msra.mxu0 %v2151_v9  ;;  %v2171_v24 = vld [vmem:[#allocation9 + $0x90] ss:$12 sps:$4 sm:$0xff]   ;;  %v2172_v25 = vld [vmem:[#allocation9 + $0x98] ss:$12 sps:$4 sm:$0xff]   ;;  %vm2536_vm0 = vmmov 0   ;;  %v2722_v37 = vshrl.u32 %v138_v35, 7 }
  0x93   :  { %2003 = vmatprep.subr.bf16.mxu1 %v2534_v4  ;;  %441 = vmatprep.subr.bf16.mxu0 %v2153_v11  ;;  %v2173_v27 = vld [vmem:[#allocation9 + $0xac] ss:$12 sps:$4 sm:$0xff]   ;;  %v2175_v28 = vld [vmem:[#allocation9 + $0xa8] ss:$12 sps:$4 sm:$0xff]   ;;  %v2176_v29 = vld [vmem:[#allocation9 + $0xb0] ss:$12 sps:$4 sm:$0xff]  }
  0x94   :  { %2015 = vmatprep.mubr.msk.bf16.mxu1 %vm2536_vm0, %v2534_v4  ;;  %v272_v38 = vsub.s32 0, %v2722_v37  ;;  %v2725_v40 = vld [vmem:[#allocation7] sm:$0xff]  ;;  %vm524_vm1 = vcmask 261120   ;;  %s157_s7 = sld [smem:[#allocation2]]  ;;  %s1819_s27 = sld [smem:[#allocation2 + $0x1]]  ;;  %v2749_v60 = vand.u32 127, %v138_v35 }
  0x95   :  { %2004 = vmatpush3.bf16.msra.mxu1 %v2156_v13  ;;  %s1820_s13 = sld [smem:[#allocation2 + $0x2]]  ;;  %s1821_s14 = sld [smem:[#allocation2 + $0x3]] }
  0x96   :  { %442 = vmatpush1.bf16.msra.mxu0 %v2155_v12  ;;  %2005 = vmatprep.subr.bf16.mxu1 %v2534_v4  ;;  %v273_v42 = vrot.slane %v2725_v40, %v272_v38  ;;  %s1822_s15 = sld [smem:[#allocation2 + $0x4]]  ;;  %s1823_s17 = sld [smem:[#allocation2 + $0x5]]  ;;  %vm160_vm2 = vcmp.eq.s32.totalorder %v2749_v60, 0  ;;  %vm166_vm3 = vcmp.eq.s32.totalorder %v2749_v60, 1  ;;  %vm172_vm4 = vcmp.eq.s32.totalorder %v2749_v60, 2 }
  0x97   :  { %443 = vmatprep.subr.bf16.mxu0 %v2157_v14  ;;  %s1824_s4 = sld [smem:[#allocation2 + $0x6]]  ;;  %s1825_s20 = sld [smem:[#allocation2 + $0x7]]  ;;  %vm178_vm5 = vcmp.eq.s32.totalorder %v2749_v60, 3  ;;  %vm184_vm6 = vcmp.eq.s32.totalorder %v2749_v60, 4  ;;  %vm190_vm7 = vcmp.eq.s32.totalorder %v2749_v60, 5  ;;  %vm196_vm8 = vcmp.eq.s32.totalorder %v2749_v60, 6 }
  0x98   :  { %s1826_s22 = sld [smem:[#allocation2 + $0x8]]  ;;  %s1827_s24 = sld [smem:[#allocation2 + $0x9]]  ;;  %vm202_vm9 = vcmp.eq.s32.totalorder %v2749_v60, 7  ;;  %vm208_vm10 = vcmp.eq.s32.totalorder %v2749_v60, 8  ;;  %vm214_vm11 = vcmp.eq.s32.totalorder %v2749_v60, 9  ;;  %vm220_vm12 = vcmp.eq.s32.totalorder %v2749_v60, 10 }
  0x99   :  { %2006 = vmatpush3.bf16.msra.mxu1 %v2160_v16  ;;  %s1828_s26 = sld [smem:[#allocation2 + $0xa]]  ;;  %s1829_s29 = sld [smem:[#allocation2 + $0xb]]  ;;  %vm226_vm13 = vcmp.eq.s32.totalorder %v2749_v60, 11  ;;  %vm232_vm14 = vcmp.eq.s32.totalorder %v2749_v60, 12  ;;  %vm238_vm15 = vcmp.eq.s32.totalorder %v2749_v60, 13 }
  0x9a   :  { %444 = vmatpush1.bf16.msra.mxu0 %v2159_v15  ;;  %2007 = vmatprep.subr.bf16.mxu1 %v2534_v4  ;;  %p158_p3 = scmp.eq.s32.totalorder %s157_s7, 0  ;;  %p164_p4 = scmp.eq.s32.totalorder %s1819_s27, 0  ;;  %v2537_v38 = vmov -1e+09  }
  0x9b   :  { %445 = vmatprep.subr.bf16.mxu0 %v2161_v17  ;;  %p170_p5 = scmp.eq.s32.totalorder %s1820_s13, 0  ;;  %p176_p6 = scmp.eq.s32.totalorder %s1821_s14, 0 }
  0x9c   :  { %s159_s16 = scalar_select %p158_p3, -1e+09, 0.0 }
  0x9d   :  { %2008 = vmatpush3.bf16.msra.mxu1 %v2164_v19  ;;  %s165_s18 = scalar_select %p164_p4, -1e+09, 0.0 }
  0x9e   :  { %446 = vmatpush1.bf16.msra.mxu0 %v2163_v18  ;;  %2009 = vmatprep.subr.bf16.mxu1 %v2534_v4  ;;  %v161_v61 = vstv %s159_s16  ;;  %s171_s30 = scalar_select %p170_p5, -1e+09, 0.0 }
  0x9f   :  { %447 = vmatprep.subr.bf16.mxu0 %v2165_v20  ;;  %v162_v62 = vsel %vm160_vm2, %v161_v61, 0.0  ;;  %v167_v63 = vstv %s165_s18  ;;  %p182_p7 = scmp.eq.s32.totalorder %s1822_s15, 0  ;;  %p188_p8 = scmp.eq.s32.totalorder %s1823_s17, 0 }
  0xa0   :  { %s177_s3 = scalar_select %p176_p6, -1e+09, 0.0 }
  0xa1   :  { %2010 = vmatpush3.bf16.msra.mxu1 %v2168_v22  ;;  %s183_s21 = scalar_select %p182_p7, -1e+09, 0.0 }
  0xa2   :  { %448 = vmatpush1.bf16.msra.mxu0 %v2167_v21  ;;  %2011 = vmatprep.subr.bf16.mxu1 %v2534_v4  ;;  %v179_v3 = vstv %s177_s3  ;;  %p194_p9 = scmp.eq.s32.totalorder %s1824_s4, 0  ;;  %p200_p10 = scmp.eq.s32.totalorder %s1825_s20, 0 }
  0xa3   :  { %449 = vmatprep.subr.bf16.mxu0 %v2169_v23  ;;  %s189_s23 = scalar_select %p188_p8, -1e+09, 0.0  ;;  %v185_v6 = vstv %s183_s21  ;;  %v140_v23 = vadd.s32 8, %v2722_v37 }
  0xa4   :  { %s195_s25 = scalar_select %p194_p9, -1e+09, 0.0 }
  0xa5   :  { %2012 = vmatpush3.bf16.msra.mxu1 %v2172_v25  ;;  %v191_v8 = vstv %s189_s23  ;;  %s201_s28 = scalar_select %p200_p10, -1e+09, 0.0  ;;  %v145_v25 = vshra.s32 %v2749_v60, 3 }
  0xa6   :  { %450 = vmatpush1.bf16.msra.mxu0 %v2171_v24  ;;  %2013 = vmatprep.subr.bf16.mxu1 %v2534_v4  ;;  %p206_p11 = scmp.eq.s32.totalorder %s1826_s22, 0  ;;  %v197_v10 = vstv %s195_s25  ;;  %p212_p12 = scmp.eq.s32.totalorder %s1827_s24, 0  ;;  %v143_v24 = vshra.s32 %v2722_v37, 3 }
  0xa7   :  { %451 = vmatprep.subr.bf16.mxu0 %v2173_v27  ;;  %s1830_s9 = sld [smem:[#allocation2 + $0xc]]  ;;  %v203_v12 = vstv %s201_s28  ;;  %p218_p13 = scmp.eq.s32.totalorder %s1828_s26, 0  ;;  %v148_v27 = vand.u32 7, %v2749_v60 }
  0xa8   :  { %s207_s1 = scalar_select %p206_p11, -1e+09, 0.0  ;;  %vm146_vm2 = vcmp.eq.s32.totalorder %v143_v24, %v145_v25 }
  0xa9   :  { %2014 = vmatpush3.bf16.msra.mxu1 %v2176_v29  ;;  %s1831_s12 = sld [smem:[#allocation2 + $0xd]]  ;;  %p224_p0 = scmp.eq.s32.totalorder %s1829_s29, 0 }
  0xaa   :  { %452 = vmatpush1.bf16.msra.mxu0 %v2175_v28  ;;  %2019 = vmatprep.subr.bf16.mxu1 %v2534_v4  ;;  %s213_s11 = scalar_select %p212_p12, -1e+09, 0.0  ;;  %v209_v14 = vstv %s207_s1  ;;  %v149_v28 = vand.u32 7, %v2722_v37 }
  0xab   :  { %2043 = vmatprep.subr.bf16.mxu0 %v2534_v4  ;;  %s1832_s6 = sld [smem:[#allocation2 + $0xe]]  ;;  %s1833_s10 = sld [smem:[#allocation2 + $0xf]] }
  0xac   :  { %s219_s5 = scalar_select %p218_p13, -1e+09, 0.0  ;;  %v215_v16 = vstv %s213_s11 }
  0xad   :  { %p230_p1 = scmp.eq.s32.totalorder %s1830_s9, 0  ;;  %s2538_s16 = smov 96  }
  0xae   :  { %s225_s7 = scalar_select %p224_p0, -1e+09, 0.0  ;;  %v221_v18 = vstv %s219_s5 }
  0xaf   :  { %p236_p2 = scmp.eq.s32.totalorder %s1831_s12, 0  ;;  %s2539_s17 = smov 32  }
  0xb0   :  { %s231_s27 = scalar_select %p230_p1, -1e+09, 0.0  ;;  %v227_v20 = vstv %s225_s7 }
  0xb1   :  { %p242_p3 = scmp.eq.s32.totalorder %s1832_s6, 0  ;;  %p248_p4 = scmp.eq.s32.totalorder %s1833_s10, 0 }
  0xb2   :  { %s237_s13 = scalar_select %p236_p2, -1e+09, 0.0  ;;  %v233_v22 = vstv %s231_s27 }
  0xb3   :  { %s243_s14 = scalar_select %p242_p3, -1e+09, 0.0 }
  0xb4   :  { %s249_s15 = scalar_select %p248_p4, -1e+09, 0.0 }
 0x11b   :  { %v258_v30 = vpop.xlane.xlu0 %257 }
 0x11c   :  { %v262_v31 = vmul.f32 0.0078125, %v258_v30  ;;  %v239_v30 = vstv %s237_s13 }
 0x11e   :  { %v264_v32 = vadd.f32 1e-06, %v262_v31  ;;  %v144_v31 = vshra.s32 %v140_v23, 3 }
 0x11f   :  { %v260_v33 = vpop.xlane.xlu0 %259 }
 0x120   :  { %2257 = vrsqrt.f32 %v264_v32  ;;  %v263_v34 = vmul.f32 0.0078125, %v260_v33  ;;  %v150_v32 = vand.u32 7, %v140_v23 }
 0x122   :  { %v265_v36 = vadd.f32 1e-06, %v263_v34  ;;  %v245_v34 = vstv %s243_s14 }
 0x124   :  { %2259 = vrsqrt.f32 %v265_v36  ;;  %v251_v36 = vstv %s249_s15 }
 0x12a   :  { %v2258_v39 = vpop.eup %2257 }
 0x12b   :  { %v268_v41 = vmul.f32 %v2258_v39, %v2701_v0  ;;  %v168_v0 = vsel %vm166_vm3, %v167_v63, %v162_v62  ;;  %vm151_vm3 = vcmp.le.s32.totalorder %v148_v27, %v149_v28 }
 0x12d   :  { %v274_v45 = vmul.f32 %v273_v42, %v268_v41 }
 0x12e   :  { %v2260_v43 = vpop.eup %2259 }
 0x12f   :  { %v269_v44 = vmul.f32 %v2260_v43, %v2703_v1  ;;  %v173_v1 = vstv %s171_s30 }
 0x130   :  { %v174_v2 = vsel %vm172_vm4, %v173_v1, %v168_v0  ;;  %vm244_vm4 = vcmp.eq.s32.totalorder %v2749_v60, 14 }
 0x131   :  { %v275_v46 = vmul.f32 %v273_v42, %v269_v44  ;;  %v180_v5 = vsel %vm178_vm5, %v179_v3, %v174_v2  ;;  %vm147_vm5 = vcmp.eq.s32.totalorder %v144_v31, %v145_v25 }
 0x132   :  { %v186_v7 = vsel %vm184_vm6, %v185_v6, %v180_v5  ;;  %vm152_vm6 = vcmp.le.s32.totalorder %v148_v27, %v150_v32 }
 0x133   :  { %v276_v47 = vpack.c.bf16 %v275_v46, %v274_v45  ;;  %v192_v9 = vsel %vm190_vm7, %v191_v8, %v186_v7  ;;  %vm153_vm7 = vmand %vm146_vm2, %vm151_vm3 }
 0x134   :  { %v198_v11 = vsel %vm196_vm8, %v197_v10, %v192_v9  ;;  %vm250_vm8 = vcmp.eq.s32.totalorder %v2749_v60, 15  ;;  %v155_v39 = vsel %vm153_vm7, 0.0, %v2537_v38 }
 0x135   :  { %470 = vmatmul.mubr.bf16.vlgmr.msra.gmra.mrb[0].mxu0 %v276_v47  ;;  %2016 = vmatmul.mubr.bf16.vlgmr.msra.gmra.mrb[0].mxu1 %v276_v47  ;;  %v204_v13 = vsel %vm202_vm9, %v203_v12, %v198_v11  ;;  %vm154_vm9 = vmand %vm147_vm5, %vm152_vm6 }
 0x136   :  { %2021 = vmatprep.mubr.msk.bf16.mxu1 %vm2536_vm0, %v2534_v4  ;;  %2045 = vmatprep.mubr.msk.bf16.mxu0 %vm2536_vm0, %v2534_v4  ;;  %v210_v15 = vsel %vm208_vm10, %v209_v14, %v204_v13  ;;  %v156_v42 = vsel %vm154_vm9, 0.0, %v2537_v38  ;;  %vm576_vm10 = vcmask 130048  }
 0x137   :  { %v216_v17 = vsel %vm214_vm11, %v215_v16, %v210_v15  ;;  %vm1048_vm11 = vcmask 523264  }
 0x138   :  { %v222_v19 = vsel %vm220_vm12, %v221_v18, %v216_v17  ;;  %vm1051_vm12 = vcmask 785408  }
 0x139   :  { %v228_v21 = vsel %vm226_vm13, %v227_v20, %v222_v19 }
 0x13a   :  { %v234_v29 = vsel %vm232_vm14, %v233_v22, %v228_v21 }
 0x13b   :  { %v240_v33 = vsel %vm238_vm15, %v239_v30, %v234_v29 }
 0x13c   :  { %v246_v35 = vsel %vm244_vm4, %v245_v34, %v240_v33 }
 0x13d   :  { %v252_v41 = vsel %vm250_vm8, %v251_v36, %v246_v35 }
 0x13e   :  { %v2772_v43 = vadd.f32 %v252_v41, %v155_v39  ;;  %v2774_v47 = vadd.f32 %v252_v41, %v156_v42 }
 0x208   :  { %v471_v48 = vpop.f32.mrb[0].mxu0  ;;  %v514_v49 = vpop.f32.mrb[0].mxu1 }
 0x209   :  { %v473_v50 = vpop.f32.mrb[1].mxu0  ;;  %v2017_v51 = vpop.f32.mrb[1].mxu1 }
 0x20a   :  { %v475_v52 = vpop.f32.mrb[2].mxu0  ;;  %v517_v53 = vpop.f32.mrb[2].mxu1 }
 0x20b   :  { %v2734_v54 = vpack.c.bf16 %v475_v52, %v471_v48  ;;  %v2736_v55 = vpack.c.bf16 %v517_v53, %v514_v49  ;;  %v477_v56 = vpop.f32.mrb[3].mxu0  ;;  %v2018_v57 = vpop.f32.mrb[3].mxu1 }
 0x20c   :  { %v2738_v58 = vpack.c.bf16 %v477_v56, %v473_v50 }
 0x20e   :  { %v529_v59 = vsel %vm524_vm1, %v2738_v58, 0 }
 0x20f   :  { %2020 = vmatpush3.bf16.xpose.msra.mxu1 %v529_v59 }
 0x210   :  { %2025 = vmatprep.subr.bf16.mxu1 %v2534_v4 }
 0x216   :  { %2022 = vmatmul.mubr.msk.bf16.vlgmr.msra.gmra.mrb[4].mxu1 %vm524_vm1, %v2734_v54 }
 0x217   :  { %2026 = vmatpush3.bf16.msra.mxu1 %v2736_v55  ;;  %2027 = vmatprep.mubr.msk.bf16.mxu1 %vm2536_vm0, %v2534_v4 }
 0x218   :  { %2031 = vmatprep.subr.bf16.mxu1 %v2534_v4 }
 0x2e9   :  { %v565_v44 = vpop.f32.mrb[4].mxu1 }
 0x2ea   :  { %v572_v45 = vmul.f32 0.17677669, %v565_v44  ;;  %v2023_v46 = vpop.f32.mrb[5].mxu1 }
 0x2eb   :  { %v568_v48 = vpop.f32.mrb[6].mxu1 }
 0x2ec   :  { %v573_v49 = vmul.f32 0.17677669, %v568_v48  ;;  %v2024_v50 = vpop.f32.mrb[7].mxu1  ;;  %v574_v51 = vadd.f32 %v572_v45, %v2772_v43 }
 0x2ee   :  { %v577_v52 = vsel %vm576_vm10, %v574_v51, -inf  ;;  %v575_v53 = vadd.f32 %v573_v49, %v2774_v47 }
 0x2ef   :  { %578 = vmax.xlane.f32.xlu1 %v577_v52 }
 0x2f0   :  { %v580_v56 = vsel %vm576_vm10, %v575_v53, -inf }
 0x2f3   :  { %581 = vmax.xlane.f32.xlu1 %v580_v56 }
 0x37c   :  { %v579_v57 = vpop.xlane.xlu1 %578 }
 0x37d   :  { %v583_v59 = vsub.f32 %v574_v51, %v579_v57 }
 0x37f   :  { %v585_v60 = vmul.f32 1.442695, %v583_v59 }
 0x380   :  { %v582_v61 = vpop.xlane.xlu1 %581 }
 0x381   :  { %2261 = vpow2.f32 %v585_v60  ;;  %v584_v62 = vsub.f32 %v575_v53, %v582_v61 }
 0x383   :  { %v587_v63 = vmul.f32 1.442695, %v584_v62 }
 0x385   :  { %2263 = vpow2.f32 %v587_v63 }
 0x38b   :  { %v2262_v0 = vpop.eup %2261 }
 0x38c   :  { %v589_v1 = vsel %vm576_vm10, %v2262_v0, 0.0 }
 0x38d   :  { %590 = vadd.xlane.f32.xlu0 %v589_v1 }
 0x38f   :  { %v2264_v2 = vpop.eup %2263 }
 0x390   :  { %v592_v3 = vsel %vm576_vm10, %v2264_v2, 0.0 }
 0x391   :  { %593 = vadd.xlane.f32.xlu1 %v592_v3 }
 0x3a2   :  { %645 = vrot.lane.b32.xlu1 %v2734_v54, %s2538_s16 }
 0x3a3   :  { %648 = vrot.lane.b32.xlu0 %v2738_v58, %s2538_s16 }
 0x3a6   :  { %774 = vrot.lane.b32.xlu1 %v2738_v58, %s2520_s2 }
 0x3a7   :  { %899 = vrot.lane.b32.xlu0 %v2738_v58, %s2539_s17 }
 0x3aa   :  { %772 = vrot.lane.b32.xlu1 %v2734_v54, %s2520_s2 }
 0x3ae   :  { %897 = vrot.lane.b32.xlu1 %v2734_v54, %s2539_s17 }
 0x41a   :  { %v591_v5 = vpop.xlane.xlu0 %590 }
 0x41b   :  { %2265 = vrcp.f32 %v591_v5 }
 0x41e   :  { %v594_v6 = vpop.xlane.xlu1 %593  ;;  %v649_v8 = vpop.permute.xlu0 %648 }
 0x41f   :  { %2267 = vrcp.f32 %v594_v6  ;;  %v654_v54 = vsel %vm524_vm1, %v649_v8, 0 }
 0x422   :  { %v646_v7 = vpop.permute.xlu1 %645  ;;  %v900_v14 = vpop.permute.xlu0 %899 }
 0x423   :  { %v905_v17 = vsel %vm524_vm1, %v900_v14, 0 }
 0x425   :  { %v2266_v10 = vpop.eup %2265 }
 0x426   :  { %v775_v9 = vpop.permute.xlu1 %774  ;;  %v597_v58 = vmul.f32 %v2266_v10, %v2262_v0 }
 0x427   :  { %v780_v11 = vsel %vm524_vm1, %v775_v9, 0 }
 0x428   :  { %2044 = vmatpush3.bf16.xpose.msra.mxu0 %v780_v11 }
 0x429   :  { %v2268_v12 = vpop.eup %2267  ;;  %2055 = vmatprep.subr.bf16.mxu0 %v2534_v4 }
 0x42a   :  { %v598_v13 = vmul.f32 %v2268_v12, %v2264_v2  ;;  %v773_v16 = vpop.permute.xlu1 %772 }
 0x42c   :  { %v599_v15 = vpack.c.bf16 %v598_v13, %v597_v58 }
 0x42e   :  { %2028 = vmatmul.mubr.msk.bf16.vlgmr.msra.gmra.mrb[8].mxu1 %vm576_vm10, %v599_v15  ;;  %v898_v18 = vpop.permute.xlu1 %897 }
 0x42f   :  { %2032 = vmatpush3.bf16.xpose.msra.mxu1 %v654_v54  ;;  %2046 = vmatmul.mubr.msk.bf16.vlgmr.msra.gmra.mrb[4].mxu0 %vm524_vm1, %v773_v16 }
 0x430   :  { %2056 = vmatpush3.bf16.xpose.msra.mxu0 %v905_v17  ;;  %2033 = vmatprep.mubr.msk.bf16.mxu1 %vm2536_vm0, %v2534_v4 }
 0x431   :  { %2057 = vmatprep.mubr.msk.bf16.mxu0 %vm2536_vm0, %v2534_v4  ;;  %2037 = vmatprep.subr.bf16.mxu1 %v2534_v4 }
 0x432   :  { %2067 = vmatprep.subr.bf16.mxu0 %v2534_v4 }
 0x436   :  { %2034 = vmatmul.mubr.msk.bf16.vlgmr.msra.gmra.mrb[12].mxu1 %vm524_vm1, %v646_v7 }
 0x437   :  { %2058 = vmatmul.mubr.msk.bf16.vlgmr.msra.gmra.mrb[8].mxu0 %vm524_vm1, %v898_v18  ;;  %2039 = vmatprep.mubr.msk.bf16.mxu1 %vm2536_vm0, %v2534_v4 }
 0x438   :  { %2083 = vmatprep.mubr.msk.bf16.mxu0 %vm2536_vm0, %v2534_v4 }
 0x501   :  { %v2812_v19 = vpop.f32.mrb[8].mxu1 }
 0x502   :  { %v2029_v20 = vpop.f32.mrb[9].mxu1  ;;  %v816_v21 = vpop.f32.mrb[4].mxu0 }
 0x503   :  { %v2814_v22 = vpop.f32.mrb[10].mxu1  ;;  %v2047_v23 = vpop.f32.mrb[5].mxu0  ;;  %v823_v29 = vmul.f32 0.17677669, %v816_v21 }
 0x504   :  { %v2030_v24 = vpop.f32.mrb[11].mxu1  ;;  %v819_v25 = vpop.f32.mrb[6].mxu0 }
 0x505   :  { %v2048_v27 = vpop.f32.mrb[7].mxu0  ;;  %v824_v44 = vmul.f32 0.17677669, %v819_v25  ;;  %v825_v48 = vadd.f32 %v823_v29, %v2772_v43 }
 0x507   :  { %v827_v52 = vsel %vm576_vm10, %v825_v48, -inf  ;;  %v826_v53 = vadd.f32 %v824_v44, %v2774_v47 }
 0x509   :  { %v690_v28 = vpop.f32.mrb[12].mxu1  ;;  %v830_v57 = vsel %vm576_vm10, %v826_v53, -inf }
 0x50a   :  { %v697_v30 = vmul.f32 0.17677669, %v690_v28  ;;  %v2035_v31 = vpop.f32.mrb[13].mxu1  ;;  %v941_v32 = vpop.f32.mrb[8].mxu0 }
 0x50b   :  { %v693_v33 = vpop.f32.mrb[14].mxu1  ;;  %v2059_v34 = vpop.f32.mrb[9].mxu0  ;;  %v948_v51 = vmul.f32 0.17677669, %v941_v32 }
 0x50c   :  { %v698_v35 = vmul.f32 0.17677669, %v693_v33  ;;  %v2036_v36 = vpop.f32.mrb[15].mxu1  ;;  %v944_v38 = vpop.f32.mrb[10].mxu0  ;;  %v699_v39 = vadd.f32 %v697_v30, %v2772_v43 }
 0x50d   :  { %v949_v41 = vmul.f32 0.17677669, %v944_v38  ;;  %v2060_v42 = vpop.f32.mrb[11].mxu0  ;;  %v950_v59 = vadd.f32 %v948_v51, %v2772_v43 }
 0x50e   :  { %v701_v45 = vsel %vm576_vm10, %v699_v39, -inf  ;;  %v700_v46 = vadd.f32 %v698_v35, %v2774_v47 }
 0x50f   :  { %702 = vmax.xlane.f32.xlu0 %v701_v45  ;;  %v951_v50 = vadd.f32 %v949_v41, %v2774_v47  ;;  %v952_v60 = vsel %vm576_vm10, %v950_v59, -inf }
 0x510   :  { %v704_v49 = vsel %vm576_vm10, %v700_v46, -inf }
 0x511   :  { %705 = vmax.xlane.f32.xlu1 %v704_v49  ;;  %v955_v56 = vsel %vm576_vm10, %v951_v50, -inf }
 0x513   :  { %828 = vmax.xlane.f32.xlu0 %v827_v52 }
 0x515   :  { %956 = vmax.xlane.f32.xlu1 %v955_v56  ;;  %v2177_v56 = vld [vmem:[#allocation10] sm:$0xff]  }
 0x516   :  { %2068 = vmatpush3.bf16.msra.mxu0 %v2177_v56  ;;  %v2205_v56 = vld [vmem:[#allocation12 + $0x64] ss:$16 sps:$4 sm:$0xff]  }
 0x517   :  { %831 = vmax.xlane.f32.xlu0 %v830_v57  ;;  %v2178_v57 = vld [vmem:[#allocation10 + $0x8] sm:$0xff]   ;;  %2069 = vmatprep.subr.bf16.mxu0 %v2534_v4 }
 0x51a   :  { %2070 = vmatpush3.bf16.msra.mxu0 %v2178_v57  ;;  %v2208_v57 = vld [vmem:[#allocation12 + $0x6c] ss:$16 sps:$4 sm:$0xff]  }
 0x51b   :  { %953 = vmax.xlane.f32.xlu0 %v952_v60  ;;  %2071 = vmatprep.subr.bf16.mxu0 %v2534_v4  ;;  %v2180_v60 = vld [vmem:[#allocation10 + $0x18] sm:$0xff]  }
 0x59c   :  { %v703_v61 = vpop.xlane.xlu0 %702 }
 0x59d   :  { %v707_v6 = vsub.f32 %v699_v39, %v703_v61  ;;  %v2181_v61 = vld [vmem:[#allocation10 + $0x20] sm:$0xff]  }
 0x59e   :  { %v706_v62 = vpop.xlane.xlu1 %705 }
 0x59f   :  { %v708_v7 = vsub.f32 %v700_v46, %v706_v62  ;;  %v709_v11 = vmul.f32 1.442695, %v707_v6 }
 0x5a0   :  { %v829_v63 = vpop.xlane.xlu0 %828 }
 0x5a1   :  { %v833_v0 = vsub.f32 %v825_v48, %v829_v63  ;;  %v711_v12 = vmul.f32 1.442695, %v708_v7  ;;  %v2184_v7 = vld [vmem:[#allocation10 + $0x38] sm:$0xff]  }
 0x5a2   :  { %v957_v1 = vpop.xlane.xlu1 %956 }
 0x5a3   :  { %v835_v2 = vmul.f32 1.442695, %v833_v0  ;;  %v959_v3 = vsub.f32 %v951_v50, %v957_v1  ;;  %v2182_v0 = vld [vmem:[#allocation10 + $0x28] sm:$0xff]  }
 0x5a4   :  { %v832_v47 = vpop.xlane.xlu0 %831 }
 0x5a5   :  { %2269 = vpow2.f32 %v835_v2  ;;  %v834_v5 = vsub.f32 %v826_v53, %v832_v47  ;;  %v962_v8 = vmul.f32 1.442695, %v959_v3  ;;  %v2183_v47 = vld [vmem:[#allocation10 + $0x30] sm:$0xff]  }
 0x5a7   :  { %v837_v9 = vmul.f32 1.442695, %v834_v5 }
 0x5a8   :  { %v954_v10 = vpop.xlane.xlu0 %953 }
 0x5a9   :  { %2271 = vpow2.f32 %v837_v9  ;;  %v958_v43 = vsub.f32 %v950_v59, %v954_v10  ;;  %v2179_v59 = vld [vmem:[#allocation10 + $0x10] sm:$0xff]  }
 0x5aa   :  { %2273 = vpow2.f32 %v962_v8  ;;  %2072 = vmatpush3.bf16.msra.mxu0 %v2179_v59  ;;  %v2203_v59 = vld [vmem:[#allocation12 + $0x60] ss:$16 sps:$4 sm:$0xff]  }
 0x5ab   :  { %v960_v58 = vmul.f32 1.442695, %v958_v43  ;;  %2073 = vmatprep.subr.bf16.mxu0 %v2534_v4 }
 0x5ad   :  { %2275 = vpow2.f32 %v960_v58 }
 0x5ae   :  { %2277 = vpow2.f32 %v709_v11  ;;  %2074 = vmatpush3.bf16.msra.mxu0 %v2180_v60  ;;  %v2206_v60 = vld [vmem:[#allocation12 + $0x68] ss:$16 sps:$4 sm:$0xff]  }
 0x5af   :  { %v2270_v13 = vpop.eup %2269  ;;  %2279 = vpow2.f32 %v711_v12  ;;  %2075 = vmatprep.subr.bf16.mxu0 %v2534_v4 }
 0x5b0   :  { %v839_v14 = vsel %vm576_vm10, %v2270_v13, 0.0 }
 0x5b1   :  { %840 = vadd.xlane.f32.xlu0 %v839_v14 }
 0x5b2   :  { %2076 = vmatpush3.bf16.msra.mxu0 %v2181_v61  ;;  %v2209_v61 = vld [vmem:[#allocation12 + $0x80] ss:$16 sps:$4 sm:$0xff]  }
 0x5b3   :  { %v2272_v15 = vpop.eup %2271  ;;  %2077 = vmatprep.subr.bf16.mxu0 %v2534_v4 }
 0x5b4   :  { %v842_v54 = vsel %vm576_vm10, %v2272_v15, 0.0  ;;  %v2274_v16 = vpop.eup %2273 }
 0x5b5   :  { %843 = vadd.xlane.f32.xlu1 %v842_v54  ;;  %v967_v21 = vsel %vm576_vm10, %v2274_v16, 0.0 }
 0x5b6   :  { %2078 = vmatpush3.bf16.msra.mxu0 %v2182_v0  ;;  %v2214_v0 = vld [vmem:[#allocation12 + $0x8c] ss:$16 sps:$4 sm:$0xff]  }
 0x5b7   :  { %v2276_v17 = vpop.eup %2275  ;;  %2079 = vmatprep.subr.bf16.mxu0 %v2534_v4 }
 0x5b8   :  { %v2278_v18 = vpop.eup %2277  ;;  %v964_v20 = vsel %vm576_vm10, %v2276_v17, 0.0 }
 0x5b9   :  { %v2280_v23 = vpop.eup %2279  ;;  %965 = vadd.xlane.f32.xlu0 %v964_v20  ;;  %968 = vadd.xlane.f32.xlu1 %v967_v21  ;;  %v713_v24 = vsel %vm576_vm10, %v2278_v18, 0.0 }
 0x5ba   :  { %v716_v25 = vsel %vm576_vm10, %v2280_v23, 0.0  ;;  %2080 = vmatpush3.bf16.msra.mxu0 %v2183_v47  ;;  %v2218_v47 = vld [vmem:[#allocation12 + $0xa8] ss:$16 sps:$4 sm:$0xff]  }
 0x5bb   :  { %2081 = vmatprep.subr.bf16.mxu0 %v2534_v4 }
 0x5bd   :  { %714 = vadd.xlane.f32.xlu0 %v713_v24  ;;  %717 = vadd.xlane.f32.xlu1 %v716_v25 }
 0x5be   :  { %2082 = vmatpush3.bf16.msra.mxu0 %v2184_v7  ;;  %v2221_v7 = vld [vmem:[#allocation12 + $0xc0] ss:$16 sps:$4 sm:$0xff]  }
 0x5ce   :  { %850 = vrot.lane.b32.xlu1 %v2736_v55, %s2520_s2 }
 0x5d2   :  { %975 = vrot.lane.b32.xlu1 %v2736_v55, %s2539_s17 }
 0x5d3   :  { %725 = vrot.lane.b32.xlu0 %v2736_v55, %s2538_s16 }
 0x63e   :  { %v841_v27 = vpop.xlane.xlu0 %840 }
 0x642   :  { %v844_v28 = vpop.xlane.xlu1 %843 }
 0x646   :  { %v966_v29 = vpop.xlane.xlu0 %965  ;;  %v969_v30 = vpop.xlane.xlu1 %968 }
 0x64a   :  { %v715_v31 = vpop.xlane.xlu0 %714  ;;  %v718_v32 = vpop.xlane.xlu1 %717 }
 0x64b   :  { %2281 = vrcp.f32 %v715_v31 }
 0x64c   :  { %2283 = vrcp.f32 %v718_v32  ;;  %v2185_v32 = vld [vmem:[#allocation12] ss:$16 sps:$4 sm:$0xff]  }
 0x64d   :  { %2285 = vrcp.f32 %v844_v28 }
 0x64e   :  { %v726_v33 = vpop.permute.xlu0 %725  ;;  %2287 = vrcp.f32 %v841_v27  ;;  %v851_v41 = vpop.permute.xlu1 %850 }
 0x64f   :  { %2038 = vmatpush3.bf16.msra.mxu1 %v726_v33  ;;  %2289 = vrcp.f32 %v966_v29  ;;  %v2187_v33 = vld [vmem:[#allocation12 + $0x4] ss:$16 sps:$4 sm:$0xff]  }
 0x650   :  { %2049 = vmatprep.subr.bf16.mxu1 %v2534_v4  ;;  %2291 = vrcp.f32 %v969_v30 }
 0x652   :  { %v976_v50 = vpop.permute.xlu1 %975 }
 0x655   :  { %v2282_v34 = vpop.eup %2281 }
 0x656   :  { %v2284_v35 = vpop.eup %2283  ;;  %v721_v36 = vmul.f32 %v2282_v34, %v2278_v18  ;;  %v2188_v34 = vld [vmem:[#allocation12 + $0x8] ss:$16 sps:$4 sm:$0xff]  }
 0x657   :  { %v722_v38 = vmul.f32 %v2284_v35, %v2280_v23  ;;  %v2286_v39 = vpop.eup %2285  ;;  %v2190_v35 = vld [vmem:[#allocation12 + $0xc] ss:$16 sps:$4 sm:$0xff]  }
 0x658   :  { %v2288_v42 = vpop.eup %2287  ;;  %v848_v44 = vmul.f32 %v2286_v39, %v2272_v15  ;;  %1418 = vmatprep.subr.bf16.mxu0 %v2190_v35  ;;  %v2202_v39 = vld [vmem:[#allocation12 + $0x4c] ss:$16 sps:$4 sm:$0xff]   ;;  %v2241_v35 = vld [vmem:[#allocation13 + $0x60] sm:$0xff]  }
 0x659   :  { %v723_v55 = vpack.c.bf16 %v722_v38, %v721_v36  ;;  %v847_v45 = vmul.f32 %v2288_v42, %v2270_v13  ;;  %v2290_v46 = vpop.eup %2289  ;;  %v2193_v36 = vld [vmem:[#allocation12 + $0x24] ss:$16 sps:$4 sm:$0xff]   ;;  %v2194_v38 = vld [vmem:[#allocation12 + $0x28] ss:$16 sps:$4 sm:$0xff]  }
 0x65a   :  { %v2292_v49 = vpop.eup %2291  ;;  %v972_v51 = vmul.f32 %v2290_v46, %v2276_v17 }
 0x65b   :  { %2040 = vmatmul.mubr.msk.bf16.vlgmr.msra.gmra.mrb[16].mxu1 %vm576_vm10, %v723_v55  ;;  %v849_v48 = vpack.c.bf16 %v848_v44, %v847_v45  ;;  %v973_v52 = vmul.f32 %v2292_v49, %v2274_v16  ;;  %v2199_v55 = vld [vmem:[#allocation12 + $0x44] ss:$16 sps:$4 sm:$0xff]   ;;  %v2317_v44 = vld [vmem:[#allocation6] sm:$0xff] }
 0x65c   :  { %2050 = vmatpush3.bf16.msra.mxu1 %v851_v41  ;;  %2051 = vmatprep.mubr.msk.bf16.mxu1 %vm2536_vm0, %v2534_v4  ;;  %v2197_v41 = vld [vmem:[#allocation12 + $0x40] ss:$16 sps:$4 sm:$0xff]  }
 0x65d   :  { %2061 = vmatprep.subr.bf16.mxu1 %v2534_v4  ;;  %v974_v53 = vpack.c.bf16 %v973_v52, %v972_v51  ;;  %v2318_v49 = vld [vmem:[#allocation6 + $0x8] sm:$0xff] }
 0x663   :  { %2052 = vmatmul.mubr.msk.bf16.vlgmr.msra.gmra.mrb[20].mxu1 %vm576_vm10, %v849_v48 }
 0x664   :  { %2062 = vmatpush3.bf16.msra.mxu1 %v976_v50  ;;  %2063 = vmatprep.mubr.msk.bf16.mxu1 %vm2536_vm0, %v2534_v4 }
 0x665   :  { %1375 = vmatprep.subr.bf16.mxu1 %v2187_v33  ;;  %v2239_v33 = vld [vmem:[#allocation13 + $0x58] sm:$0xff]  }
 0x66b   :  { %2064 = vmatmul.mubr.msk.bf16.vlgmr.msra.gmra.mrb[24].mxu1 %vm576_vm10, %v974_v53 }
 0x66c   :  { %1407 = vmatprep.mubr.bf16.mxu1 %v2535_v26  ;;  %1376 = vmatpush1.bf16.msra.mxu1 %v2185_v32  ;;  %v2238_v32 = vld [vmem:[#allocation13 + $0x10] sm:$0xff]  }
 0x66d   :  { %1377 = vmatprep.subr.bf16.mxu1 %v2193_v36  ;;  %v2242_v36 = vld [vmem:[#allocation13 + $0x20] sm:$0xff]  }
 0x72e   :  { %v765_v62 = vpop.f32.mrb[16].mxu1 }
 0x72f   :  { %v2041_v63 = vpop.f32.mrb[17].mxu1 }
 0x730   :  { %v768_v1 = vpop.f32.mrb[18].mxu1  ;;  %v2212_v63 = vld [vmem:[#allocation12 + $0x88] ss:$16 sps:$4 sm:$0xff]  }
 0x731   :  { %v2130_v2 = vpack.i.bf16 %v768_v1, %v765_v62  ;;  %v2042_v3 = vpop.f32.mrb[19].mxu1  ;;  %v2211_v62 = vld [vmem:[#allocation12 + $0x84] ss:$16 sps:$4 sm:$0xff]  }
 0x732   :  { %v2217_v1 = vld [vmem:[#allocation12 + $0xa4] ss:$16 sps:$4 sm:$0xff]   ;;  %v2215_v3 = vld [vmem:[#allocation12 + $0xa0] ss:$16 sps:$4 sm:$0xff]  }
 0x733   :  { %2131 = vrot.lane.b32.xlu1 %v2130_v2, %s2539_s17  ;;  %v2220_v2 = vld [vmem:[#allocation12 + $0xac] ss:$16 sps:$4 sm:$0xff]  }
 0x736   :  { %v890_v5 = vpop.f32.mrb[20].mxu1 }
 0x737   :  { %v2053_v6 = vpop.f32.mrb[21].mxu1 }
 0x738   :  { %v893_v8 = vpop.f32.mrb[22].mxu1  ;;  %v2226_v6 = vld [vmem:[#allocation12 + $0xcc] ss:$16 sps:$4 sm:$0xff]  }
 0x739   :  { %v2135_v9 = vpack.i.bf16 %v893_v8, %v890_v5  ;;  %v2054_v10 = vpop.f32.mrb[23].mxu1  ;;  %v2223_v5 = vld [vmem:[#allocation12 + $0xc4] ss:$16 sps:$4 sm:$0xff]   ;;  %v2224_v8 = vld [vmem:[#allocation12 + $0xc8] ss:$16 sps:$4 sm:$0xff]  }
 0x73a   :  { %v2232_v10 = vld [vmem:[#allocation12 + $0xec] ss:$16 sps:$4 sm:$0xff]  }
 0x73b   :  { %2136 = vrot.lane.b32.xlu0 %v2135_v9, %s2520_s2  ;;  %v2229_v9 = vld [vmem:[#allocation12 + $0xe4] ss:$16 sps:$4 sm:$0xff]   ;;  %s2540_s2 = smov [#allocation16]  }
 0x73c   :  { %s1803_s18 = sshll.u32 %s2540_s2, 4  ;;  %s1804_s18 = int_to_ptr.vmem [resolvable:$true] %s1803_s18 }
 0x73d   :  { %s2484_s4 = scalar_lea.vmem %s1804_s18, 256  ;;  %p2489_p6 = scmp.lt.s32.totalorder %s1804_s18, %s1804_s18 }
 0x73e   :  { %v1015_v43 = vpop.f32.mrb[24].mxu1  ;;  %p2485_p5 = scmp.ne.s32.totalorder %s1804_s18, %s2484_s4  ;;  %p2490_p7 = scmp.lt.s32.totalorder %s2484_s4, %s2484_s4 }
 0x73f   :  { %v2065_v11 = vpop.f32.mrb[25].mxu1 }
 0x740   :  { %v1018_v12 = vpop.f32.mrb[26].mxu1  ;;  %v2230_v11 = vld [vmem:[#allocation12 + $0xe8] ss:$16 sps:$4 sm:$0xff]   ;;  %p2491_p8 = por %p2490_p7, %p2489_p6 }
 0x741   :  { %v2140_v58 = vpack.i.bf16 %v1018_v12, %v1015_v43  ;;  %v2066_v13 = vpop.f32.mrb[27].mxu1  ;;  %v2227_v43 = vld [vmem:[#allocation12 + $0xe0] ss:$16 sps:$4 sm:$0xff]  }
 0x742   :  { %p2492_p9 = pnand %p2491_p8, %p2485_p5 }
 0x743   :  { %2141 = vrot.lane.b32.xlu1 %v2140_v58, %s2538_s16 }
 0x7a5   :  { %v2132_v14 = vpop.permute.xlu1 %2131 }
 0x7a6   :  { %v2134_v54 = vunpack.i.h.bf16 %v2132_v14  ;;  %v2133_v16 = vunpack.i.l.bf16 %v2132_v14 }
 0x7a8   :  { %v1047_v21 = vsel %vm524_vm1, %v2814_v22, %v2134_v54  ;;  %v1046_v23 = vsel %vm524_vm1, %v2812_v19, %v2133_v16  ;;  %v2196_v22 = vld [vmem:[#allocation12 + $0x2c] ss:$16 sps:$4 sm:$0xff]   ;;  %v2191_v19 = vld [vmem:[#allocation12 + $0x20] ss:$16 sps:$4 sm:$0xff]   ;;  %v1178_v16 = vsub.s32 1, %v2722_v37 }
 0x7a9   :  { %1378 = vmatpush1.bf16.msra.mxu1 %v2191_v19  ;;  %v2244_v19 = vld [vmem:[#allocation13 + $0x28] sm:$0xff]  }
 0x7aa   :  { %1379 = vmatprep.subr.bf16.mxu1 %v2199_v55  ;;  %v2246_v55 = vld [vmem:[#allocation13 + $0x30] sm:$0xff]  }
 0x7ad   :  { %v2137_v15 = vpop.permute.xlu0 %2136  ;;  %1380 = vmatpush1.bf16.msra.mxu1 %v2197_v41  ;;  %v2248_v41 = vld [vmem:[#allocation13 + $0x38] sm:$0xff]  }
 0x7ae   :  { %v2139_v17 = vunpack.i.h.bf16 %v2137_v15  ;;  %v2138_v18 = vunpack.i.l.bf16 %v2137_v15  ;;  %1381 = vmatprep.subr.bf16.mxu1 %v2205_v56 }
 0x7b0   :  { %v1050_v27 = vsel %vm1048_vm11, %v1047_v21, %v2139_v17  ;;  %v1049_v28 = vsel %vm1048_vm11, %v1046_v23, %v2138_v18 }
 0x7b1   :  { %1382 = vmatpush1.bf16.msra.mxu1 %v2203_v59 }
 0x7b2   :  { %1383 = vmatprep.subr.bf16.mxu1 %v2211_v62 }
 0x7b5   :  { %v2142_v20 = vpop.permute.xlu1 %2141  ;;  %1384 = vmatpush1.bf16.msra.mxu1 %v2209_v61 }
 0x7b6   :  { %v2144_v24 = vunpack.i.h.bf16 %v2142_v20  ;;  %v2143_v25 = vunpack.i.l.bf16 %v2142_v20  ;;  %1385 = vmatprep.subr.bf16.mxu1 %v2217_v1  ;;  %v1179_v20 = vrot.slane %v2725_v40, %v1178_v16  ;;  %v2237_v40 = vld [vmem:[#allocation13 + $0x50] sm:$0xff]   ;;  %v2250_v16 = vld [vmem:[#allocation15 + $0x8] sm:$0xff]  }
 0x7b8   :  { %v1053_v29 = vsel %vm1051_vm12, %v1050_v27, %v2144_v24  ;;  %v1052_v30 = vsel %vm1051_vm12, %v1049_v28, %v2143_v25  ;;  %v2233_v28 = vld [vmem:[#allocation13 + $0x40] sm:$0xff]  }
 0x7b9   :  { %v1054_v31 = vpack.c.bf16 %v1053_v29, %v1052_v30  ;;  %1386 = vmatpush1.bf16.msra.mxu1 %v2215_v3  ;;  %v2234_v29 = vld [vmem:[#allocation13] sm:$0xff]   ;;  %v2235_v30 = vld [vmem:[#allocation13 + $0x48] sm:$0xff]  }
 0x7ba   :  { %1387 = vmatprep.subr.bf16.mxu1 %v2223_v5 }
 0x7bb   :  { %2084 = vmatmul.mubr.bf16.vlgmr.msra.gmra.mrb[12].mxu0 %v1054_v31  ;;  %v2236_v31 = vld [vmem:[#allocation13 + $0x8] sm:$0xff]  }
 0x7bc   :  { %1450 = vmatprep.mubr.bf16.mxu0 %v2535_v26  ;;  %1419 = vmatpush1.bf16.msra.mxu0 %v2188_v34  ;;  %v2200_v26 = vld [vmem:[#allocation12 + $0x48] ss:$16 sps:$4 sm:$0xff]  }
 0x7bd   :  { %1420 = vmatprep.subr.bf16.mxu0 %v2196_v22  ;;  %1388 = vmatpush1.bf16.msra.mxu1 %v2221_v7  ;;  %v2240_v34 = vld [vmem:[#allocation13 + $0x18] sm:$0xff]   ;;  %v2243_v22 = vld [vmem:[#allocation13 + $0x68] sm:$0xff]  }
 0x7be   :  { %1389 = vmatprep.subr.bf16.mxu1 %v2229_v9 }
 0x7c0   :  { %1421 = vmatpush1.bf16.msra.mxu0 %v2194_v38  ;;  %v2245_v38 = vld [vmem:[#allocation13 + $0x70] sm:$0xff]  }
 0x7c1   :  { %1422 = vmatprep.subr.bf16.mxu0 %v2202_v39  ;;  %1390 = vmatpush1.bf16.msra.mxu1 %v2227_v43  ;;  %v2247_v39 = vld [vmem:[#allocation13 + $0x78] sm:$0xff]  }
 0x7c2   :  { %1968 = vmatprep.subr.bf16.mxu1 %v2233_v28 }
 0x7c4   :  { %1423 = vmatpush1.bf16.msra.mxu0 %v2200_v26 }
 0x7c5   :  { %1424 = vmatprep.subr.bf16.mxu0 %v2208_v57 }
 0x7c8   :  { %1425 = vmatpush1.bf16.msra.mxu0 %v2206_v60 }
 0x7c9   :  { %1426 = vmatprep.subr.bf16.mxu0 %v2214_v0 }
 0x7cc   :  { %1427 = vmatpush1.bf16.msra.mxu0 %v2212_v63 }
 0x7cd   :  { %1428 = vmatprep.subr.bf16.mxu0 %v2220_v2 }
 0x7d0   :  { %1429 = vmatpush1.bf16.msra.mxu0 %v2218_v47 }
 0x7d1   :  { %1430 = vmatprep.subr.bf16.mxu0 %v2226_v6 }
 0x7d4   :  { %1431 = vmatpush1.bf16.msra.mxu0 %v2224_v8 }
 0x7d5   :  { %1432 = vmatprep.subr.bf16.mxu0 %v2232_v10 }
 0x7d8   :  { %1433 = vmatpush1.bf16.msra.mxu0 %v2230_v11 }
 0x7d9   :  { %2087 = vmatprep.subr.bf16.mxu0 %v2534_v4 }
 0x88e   :  { %v1153_v42 = vpop.f32.mrb[12].mxu0 }
 0x88f   :  { %v2865_v45 = vadd.f32 %v2317_v44, %v1153_v42  ;;  %v2085_v46 = vpop.f32.mrb[13].mxu0 }
 0x890   :  { %v1156_v48 = vpop.f32.mrb[14].mxu0 }
 0x891   :  { %v2867_v50 = vadd.f32 %v2318_v49, %v1156_v48  ;;  %v2086_v51 = vpop.f32.mrb[15].mxu0  ;;  %v1162_v52 = vmul.f32 %v2865_v45, %v2865_v45 }
 0x893   :  { %1164 = vadd.xlane.f32.xlu0 %v1162_v52  ;;  %v1163_v53 = vmul.f32 %v2867_v50, %v2867_v50 }
 0x895   :  { %1166 = vadd.xlane.f32.xlu1 %v1163_v53 }
 0x920   :  { %v1165_v12 = vpop.xlane.xlu0 %1164 }
 0x921   :  { %v1168_v58 = vmul.f32 0.0078125, %v1165_v12 }
 0x922   :  { %v1167_v13 = vpop.xlane.xlu1 %1166 }
 0x923   :  { %v1170_v14 = vadd.f32 1e-06, %v1168_v58  ;;  %v1169_v15 = vmul.f32 0.0078125, %v1167_v13 }
 0x925   :  { %2293 = vrsqrt.f32 %v1170_v14  ;;  %v1171_v54 = vadd.f32 1e-06, %v1169_v15 }
 0x927   :  { %2295 = vrsqrt.f32 %v1171_v54  ;;  %v2249_v54 = vld [vmem:[#allocation15] sm:$0xff]  }
 0x92f   :  { %v2294_v17 = vpop.eup %2293 }
 0x930   :  { %v1174_v18 = vmul.f32 %v2294_v17, %v2865_v45 }
 0x931   :  { %v2296_v21 = vpop.eup %2295 }
 0x932   :  { %v1175_v23 = vmul.f32 %v2296_v21, %v2867_v50  ;;  %v1180_v24 = vmul.f32 %v1179_v20, %v1174_v18 }
 0x934   :  { %v1181_v25 = vmul.f32 %v1179_v20, %v1175_v23 }
 0x936   :  { %v1182_v27 = vpack.c.bf16 %v1181_v25, %v1180_v24 }
 0x938   :  { %1408 = vmatmul.mubr.bf16.vlgmr.msra.gmra.mrb[28].mxu1 %v1182_v27  ;;  %1451 = vmatmul.mubr.bf16.vlgmr.msra.gmra.mrb[16].mxu0 %v1182_v27 }
 0x939   :  { %2103 = vmatprep.mubr.msk.bf16.mxu0 %vm2536_vm0, %v2534_v4  ;;  %1969 = vmatpush3.bf16.msra.mxu1 %v2234_v29 }
 0x93a   :  { %1970 = vmatprep.subr.bf16.mxu1 %v2235_v30  ;;  %2088 = vmatpush3.bf16.msra.mxu0 %v2249_v54  ;;  %v2251_v30 = vld [vmem:[#allocation15 + $0x10] sm:$0xff]  }
 0x93b   :  { %2089 = vmatprep.subr.bf16.mxu0 %v2534_v4 }
 0x93d   :  { %1971 = vmatpush3.bf16.msra.mxu1 %v2236_v31  ;;  %v2252_v31 = vld [vmem:[#allocation15 + $0x18] sm:$0xff]  }
 0x93e   :  { %1972 = vmatprep.subr.bf16.mxu1 %v2237_v40  ;;  %2090 = vmatpush3.bf16.msra.mxu0 %v2250_v16  ;;  %v2253_v40 = vld [vmem:[#allocation15 + $0x20] sm:$0xff]  }
 0x93f   :  { %2091 = vmatprep.subr.bf16.mxu0 %v2534_v4 }
 0x941   :  { %1973 = vmatpush3.bf16.msra.mxu1 %v2238_v32  ;;  %v2254_v32 = vld [vmem:[#allocation15 + $0x28] sm:$0xff]  }
 0x942   :  { %1974 = vmatprep.subr.bf16.mxu1 %v2239_v33  ;;  %2092 = vmatpush3.bf16.msra.mxu0 %v2251_v30 }
 0x943   :  { %2093 = vmatprep.subr.bf16.mxu0 %v2534_v4 }
 0x945   :  { %1975 = vmatpush3.bf16.msra.mxu1 %v2240_v34 }
 0x946   :  { %1976 = vmatprep.subr.bf16.mxu1 %v2241_v35  ;;  %2094 = vmatpush3.bf16.msra.mxu0 %v2252_v31 }
 0x947   :  { %2095 = vmatprep.subr.bf16.mxu0 %v2534_v4 }
 0x949   :  { %1977 = vmatpush3.bf16.msra.mxu1 %v2242_v36 }
 0x94a   :  { %1978 = vmatprep.subr.bf16.mxu1 %v2243_v22  ;;  %2096 = vmatpush3.bf16.msra.mxu0 %v2253_v40 }
 0x94b   :  { %2097 = vmatprep.subr.bf16.mxu0 %v2534_v4 }
 0x94d   :  { %1979 = vmatpush3.bf16.msra.mxu1 %v2244_v19 }
 0x94e   :  { %1980 = vmatprep.subr.bf16.mxu1 %v2245_v38  ;;  %2098 = vmatpush3.bf16.msra.mxu0 %v2254_v32  ;;  %v1682_v38 = vsub.s32 2, %v2722_v37 }
 0x94f   :  { %2099 = vmatprep.subr.bf16.mxu0 %v2534_v4 }
 0x951   :  { %1981 = vmatpush3.bf16.msra.mxu1 %v2246_v55 }
 0x952   :  { %1982 = vmatprep.subr.bf16.mxu1 %v2247_v39 }
 0x955   :  { %1983 = vmatpush3.bf16.msra.mxu1 %v2248_v41  ;;  %v2319_v41 = vld [vmem:[#allocation7] sm:$0xff] }
 0xa0b   :  { %v1409_v26 = vpop.f32.mrb[28].mxu1  ;;  %v1452_v42 = vpop.f32.mrb[16].mxu0 }
 0xa0c   :  { %v1906_v44 = vmul.f32 -1.442695, %v1409_v26  ;;  %v1411_v46 = vpop.f32.mrb[29].mxu1  ;;  %v1454_v48 = vpop.f32.mrb[17].mxu0 }
 0xa0d   :  { %v1907_v49 = vmul.f32 -1.442695, %v1411_v46  ;;  %v1413_v51 = vpop.f32.mrb[30].mxu1  ;;  %v1456_v52 = vpop.f32.mrb[18].mxu0 }
 0xa0e   :  { %2297 = vpow2.f32 %v1906_v44  ;;  %v1908_v53 = vmul.f32 -1.442695, %v1413_v51  ;;  %v1415_v56 = vpop.f32.mrb[31].mxu1  ;;  %v1458_v57 = vpop.f32.mrb[19].mxu0 }
 0xa0f   :  { %2299 = vpow2.f32 %v1907_v49  ;;  %v1909_v59 = vmul.f32 -1.442695, %v1415_v56  ;;  %v1705_v49 = vsub.s32 3, %v2722_v37 }
 0xa10   :  { %2301 = vpow2.f32 %v1908_v53 }
 0xa11   :  { %2303 = vpow2.f32 %v1909_v59 }
 0xa18   :  { %v2298_v60 = vpop.eup %2297 }
 0xa19   :  { %v2300_v61 = vpop.eup %2299  ;;  %v1473_v62 = vadd.f32 1.0, %v2298_v60 }
 0xa1a   :  { %v2302_v63 = vpop.eup %2301  ;;  %v1474_v0 = vadd.f32 1.0, %v2300_v61 }
 0xa1b   :  { %v2304_v1 = vpop.eup %2303  ;;  %2305 = vrcp.f32 %v1473_v62  ;;  %v1475_v2 = vadd.f32 1.0, %v2302_v63 }
 0xa1c   :  { %2307 = vrcp.f32 %v1474_v0  ;;  %v1476_v3 = vadd.f32 1.0, %v2304_v1 }
 0xa1d   :  { %2309 = vrcp.f32 %v1475_v2 }
 0xa1e   :  { %2311 = vrcp.f32 %v1476_v3 }
 0xa25   :  { %v2306_v47 = vpop.eup %2305 }
 0xa26   :  { %v2308_v5 = vpop.eup %2307  ;;  %v1485_v6 = vmul.f32 %v2306_v47, %v1409_v26  ;;  %v1683_v26 = vrot.slane %v2319_v41, %v1682_v38 }
 0xa27   :  { %v2310_v7 = vpop.eup %2309  ;;  %v1486_v8 = vmul.f32 %v2308_v5, %v1411_v46 }
 0xa28   :  { %v2312_v9 = vpop.eup %2311  ;;  %v1489_v10 = vmul.f32 %v1485_v6, %v1452_v42  ;;  %v1487_v43 = vmul.f32 %v2310_v7, %v1413_v51  ;;  %v1706_v51 = vrot.slane %v2319_v41, %v1705_v49 }
 0xa29   :  { %v1490_v11 = vmul.f32 %v1486_v8, %v1454_v48  ;;  %v1488_v12 = vmul.f32 %v2312_v9, %v1415_v56 }
 0xa2a   :  { %v1491_v58 = vmul.f32 %v1487_v43, %v1456_v52 }
 0xa2b   :  { %v1492_v13 = vmul.f32 %v1488_v12, %v1458_v57 }
 0xa2c   :  { %v1493_v14 = vpack.c.bf16 %v1491_v58, %v1489_v10 }
 0xa2d   :  { %v1494_v15 = vpack.c.bf16 %v1492_v13, %v1490_v11 }
 0xa2f   :  { %1655 = vmatprep.mubr.bf16.mxu1 %v1494_v15 }
 0xa30   :  { %1656 = vmatmul.mubr.bf16.vlgmr.msra.gmra.mrb[32].mxu1 %v1493_v14 }
 0xb03   :  { %v1984_v17 = vpop.f32.mrb[32].mxu1 }
 0xb04   :  { %v1985_v18 = vpop.f32.mrb[33].mxu1 }
 0xb05   :  { %v1986_v20 = vadd.f32 %v1985_v18, %v1984_v17  ;;  %v1987_v21 = vpop.f32.mrb[34].mxu1 }
 0xb06   :  { %v1988_v23 = vpop.f32.mrb[35].mxu1 }
 0xb07   :  { %v1664_v24 = vadd.f32 %v1986_v20, %v2865_v45  ;;  %v1989_v25 = vadd.f32 %v1988_v23, %v1987_v21  ;;  %v2255_v45 = vld [vmem:[#allocation15 + $0x30] sm:$0xff]  }
 0xb08   :  { %2100 = vmatpush3.bf16.msra.mxu0 %v2255_v45 }
 0xb09   :  { %v1665_v27 = vadd.f32 %v1989_v25, %v2867_v50  ;;  %v1666_v28 = vmul.f32 %v1664_v24, %v1664_v24  ;;  %v2256_v50 = vld [vmem:[#allocation15 + $0x38] sm:$0xff]   ;;  %2101 = vmatprep.subr.bf16.mxu0 %v2534_v4 }
 0xb0b   :  { %1668 = vadd.xlane.f32.xlu0 %v1666_v28  ;;  %v1667_v29 = vmul.f32 %v1665_v27, %v1665_v27 }
 0xb0c   :  { %2102 = vmatpush3.bf16.msra.mxu0 %v2256_v50 }
 0xb0f   :  { %1670 = vadd.xlane.f32.xlu0 %v1667_v29 }
 0xb98   :  { %v1669_v33 = vpop.xlane.xlu0 %1668 }
 0xb99   :  { %v1672_v34 = vmul.f32 0.0078125, %v1669_v33 }
 0xb9b   :  { %v1674_v35 = vadd.f32 1e-06, %v1672_v34 }
 0xb9c   :  { %v1671_v36 = vpop.xlane.xlu0 %1670 }
 0xb9d   :  { %2313 = vrsqrt.f32 %v1674_v35  ;;  %v1673_v22 = vmul.f32 0.0078125, %v1671_v36 }
 0xb9f   :  { %v1675_v19 = vadd.f32 1e-06, %v1673_v22 }
 0xba1   :  { %2315 = vrsqrt.f32 %v1675_v19 }
 0xba7   :  { %v2314_v55 = vpop.eup %2313 }
 0xba8   :  { %v1678_v39 = vmul.f32 %v2314_v55, %v1664_v24 }
 0xbaa   :  { %v1684_v46 = vmul.f32 %v1683_v26, %v1678_v39 }
 0xbab   :  { %v2316_v42 = vpop.eup %2315 }
 0xbac   :  { %v1679_v44 = vmul.f32 %v2316_v42, %v1665_v27 }
 0xbae   :  { %v1685_v48 = vmul.f32 %v1683_v26, %v1679_v44 }
 0xbb0   :  { %v1686_v4 = vpack.c.bf16 %v1685_v48, %v1684_v46 }
 0xbb2   :  { %2104 = vmatmul.mubr.bf16.vlgmr.msra.gmra.mrb[20].mxu0 %v1686_v4 }
 0xc85   :  { %v1789_v52 = vpop.f32.mrb[20].mxu0 }
 0xc86   :  { %v1790_v53 = vadd.f32 %v1789_v52, %v1706_v51  ;;  %v2105_v56 = vpop.f32.mrb[21].mxu0 }
 0xc87   :  { %v1792_v57 = vpop.f32.mrb[22].mxu0 }
 0xc88   :  { %1796 = vst [vmem:[#allocation16] sm:$0xff] %v1790_v53  ;;  %v1793_v59 = vadd.f32 %v1792_v57, %v1706_v51  ;;  %v2106_v60 = vpop.f32.mrb[23].mxu0 }
 0xc8a   :  { %1797 = vst [vmem:[#allocation16 + $0x8] sm:$0xff] %v1793_v59 }
 0xc8b   :  { %2495 = shalt.err (!%p2492_p9)
}
 0xc8c   :  { %s2496_s3 = scalar_lea.hbm %s2914_s8, 256 }
 0xc8d   :  { %p2497_p10 = scmp.ne.s32.totalorder %s2914_s8, %s2496_s3  ;;  %p2500_p11 = scmp.lt.u32.totalorder %s2496_s3, %s2914_s8 }
 0xc8f   :  { %p2502_p12 = pnand %p2500_p11, %p2497_p10 }
 0xc91   :  { %2505 = shalt.err (!%p2502_p12)
}
 0xc92   :  { %1809 = dma.vmem_to_hbm [thread:$0]  %s1804_s18, 256, %s2914_s8, [#allocation4], %s2525_s0, %s2525_s0, %s2526_s19  }
 0xc93   :  { %2516 = dma.done.wait [#allocation4], 256  }
 0xc94   :  { %2517 = vsyncadd [#allocation4], 4294967040 }
 0xc95   :  { %1813 = vsyncpa [#allocation3], 1 }
 0xc96   :  { %1814 = vsyncpa [#allocation8], 1 }
 0xc97   :  { %1815 = vsyncpa [#allocation11], 1 }
 0xc98   :  { %1816 = vsyncpa [#allocation14], 1 }
 0xc99   :  { %1817 = vsyncpa [#allocation4], 1 }
 0xc9a   :  { %1818 = vsyncpa [#allocation5], 1 }

</bundles_post_ra>
